<compile_context>
chip_gen: v7x
topology: tpu7x:2x2x1
jax: 0.10.0
libtpu: 0.0.40
codegen_flags: <defaults>
</compile_context>

<pallas_src>
import functools
import math

import jax
import jax.numpy as jnp
from jax.experimental import pallas as pl
from jax.experimental.pallas import tpu as pltpu


# -----------------------------------------------------------------------------
# Fused per-scale Pallas kernel
# -----------------------------------------------------------------------------

def _conv3x3_same(x_2d, pad_ref, w, b, H, W, relu):
    """'same' 3x3 conv on one [H*W, Cin] sample via 9 per-tap MXU matmuls.

    x_2d   : [H*W, Cin] f32 value
    pad_ref: VMEM scratch [H+2, W+2, Cin] whose border is already zero
    w      : [9*Cin, Cout] bf16 value (tap-major rows), b: [1, Cout] f32
    returns  [H*W, Cout] f32
    """
    HW, Cin = x_2d.shape
    # interior write only; the border stays zero from the per-sample clear
    pad_ref[1:1 + H, 1:1 + W, :] = x_2d.reshape(H, W, Cin)
    acc = None
    for t in range(9):
        dy, dx = divmod(t, 3)
        if dy == 1 and dx == 1:
            tap = x_2d                                       # center: no reload
        else:
            tap = pad_ref[dy:dy + H, dx:dx + W, :].reshape(HW, Cin)
        part = jnp.dot(tap.astype(jnp.bfloat16), w[t * Cin:(t + 1) * Cin, :],
                       preferred_element_type=jnp.float32)
        acc = part if acc is None else acc + part
    acc = acc + b
    if relu:
        acc = jnp.maximum(acc, 0.0)
    return acc


def _fused_scale_kernel(x_ref, pw_ref, pb_ref,
                        w1_ref, b1_ref, w2_ref, b2_ref, m1_ref, m2_ref,
                        z_ref, jac_ref,
                        zc_ref, jc_ref, pad1_ref, pad2_ref,
                        *, H, W, C, clamp, eps):
    step = pl.program_id(1)
    C2 = C // 2
    C1 = C - C2

    # ---- per-sample prologue: halo zeroing, 1x1 projection, LayerNorm -------
    @pl.when(step == 0)
    def _init():
        # Zeroed once per *sample* (not once per kernel): scratch is per
        # TensorCore and under a megacore batch split program_id(0)==0 is
        # never seen by the second core.  Only the border actually needs it
        # (the interior is rewritten by every conv), so this is a small
        # fraction of one flow step's work.
        pad1_ref[...] = jnp.zeros_like(pad1_ref)
        pad2_ref[...] = jnp.zeros_like(pad2_ref)
        feat = jnp.dot(x_ref[0], pw_ref[...],
                       preferred_element_type=jnp.float32) + pb_ref[...]
        # LayerNorm([C, H, W]): stats over every element of the sample (f32).
        # TODO(synk): real checkpoint LN affine weights (stored CHW) would be
        # applied here after permuting to (H*W, C); default init is identity.
        mean = jnp.mean(jnp.mean(feat, axis=1, keepdims=True),
                        axis=0, keepdims=True)
        diff = feat - mean
        var = jnp.mean(jnp.mean(diff * diff, axis=1, keepdims=True),
                       axis=0, keepdims=True)
        zc_ref[...] = diff * jax.lax.rsqrt(var + eps)
        jc_ref[...] = jnp.zeros_like(jc_ref)

    # ---- one AllInOneBlock step (per-step weights streamed by the grid) -----
    z = zc_ref[...]                                      # [HW, C] f32 carry
    x1 = z[:, :C1]
    x2 = z[:, C1:]
    # subnet: conv -> ReLU -> conv   ("a *= 0.1" folded into w2/b2)
    h = _conv3x3_same(x1, pad1_ref, w1_ref[0], b1_ref[0], H, W, relu=True)
    a = _conv3x3_same(h, pad2_ref, w2_ref[0], b2_ref[0], H, W, relu=False)
    # affine coupling (f32 elementwise / EUP math)
    s = clamp * jnp.tanh(a[:, :C2])
    t = a[:, C2:]
    y2 = x2 * jnp.exp(s) + t
    jc_ref[...] += jnp.sum(jnp.sum(s, axis=1, keepdims=True),
                           axis=0, keepdims=True)
    # global affine scale + hard channel permutation folded into one matmul,
    # kept in f32 so z does not accumulate bf16 rounding across flow steps.
    zc_ref[...] = (jnp.dot(x1, m1_ref[0], preferred_element_type=jnp.float32)
                   + jnp.dot(y2, m2_ref[0], preferred_element_type=jnp.float32))

    # ---- epilogue: store outputs once per sample -----------------------------
    @pl.when(step == pl.num_programs(1) - 1)
    def _store():
        z_ref[0] = zc_ref[...]
        jac_ref[...] = jc_ref[...].reshape(1, 1, 1)


def _vmem_limit_bytes():
    """Generation-aware scoped-VMEM limit (review item): ~85% of physical
    VMEM, capped at 112 MiB (v5e/v6e: 128 MiB, v7x: 64 MiB per core)."""
    cap = 64 * 1024 * 1024
    try:
        cap = int(pltpu.get_tpu_info().vmem_capacity_bytes)
    except Exception:
        pass
    return max(32 * 1024 * 1024, min(112 * 1024 * 1024, int(cap * 0.85)))


def fused_scale_forward(x_s2d, sp, *, clamp, eps=1e-5):
    """Run the fused per-scale kernel.  x_s2d: [B, H*W, 3*scale*scale] bf16."""
    B, HW, cin_proj = x_s2d.shape
    H, W, C, hidden = sp['H'], sp['W'], sp['C'], sp['hidden']
    C2 = C // 2
    C1 = C - C2
    n_steps = sp['w1s'].shape[0]

    def bcast_spec(arr):
        return pl.BlockSpec(arr.shape, lambda b, s, _nd=arr.ndim: (0,) * _nd)

    def step_spec(arr):
        return pl.BlockSpec((1,) + arr.shape[1:], lambda b, s: (s, 0, 0))

    inputs = [x_s2d, sp['proj_w'], sp['proj_b'],
              sp['w1s'], sp['b1s'], sp['w2s'], sp['b2s'],
              sp['m1s'], sp['m2s']]
    in_specs = [pl.BlockSpec((1, HW, cin_proj), lambda b, s: (b, 0, 0)),
                bcast_spec(sp['proj_w']), bcast_spec(sp['proj_b']),
                step_spec(sp['w1s']), step_spec(sp['b1s']),
                step_spec(sp['w2s']), step_spec(sp['b2s']),
                step_spec(sp['m1s']), step_spec(sp['m2s'])]

    kernel = functools.partial(_fused_scale_kernel, H=H, W=W, C=C,
                               clamp=clamp, eps=eps)

    z, jac = pl.pallas_call(
        kernel,
        out_shape=(jax.ShapeDtypeStruct((B, HW, C), jnp.float32),
                   jax.ShapeDtypeStruct((B, 1, 1), jnp.float32)),
        grid_spec=pltpu.PrefetchScalarGridSpec(
            num_scalar_prefetch=0,
            grid=(B, n_steps),
            in_specs=in_specs,
            out_specs=(pl.BlockSpec((1, HW, C), lambda b, s: (b, 0, 0)),
                       pl.BlockSpec((1, 1, 1), lambda b, s: (b, 0, 0))),
            scratch_shapes=[
                pltpu.VMEM((HW, C), jnp.float32),             # z carry
                pltpu.VMEM((1, 1), jnp.float32),              # log|J| carry
                pltpu.VMEM((H + 2, W + 2, C1), jnp.float32),  # conv1 halo
                pltpu.VMEM((H + 2, W + 2, hidden), jnp.float32),  # conv2 halo
            ]),
        compiler_params=pltpu.CompilerParams(
            dimension_semantics=("parallel", "arbitrary"),
            vmem_limit_bytes=_vmem_limit_bytes()),
    )(*inputs)
    return z, jac


# -----------------------------------------------------------------------------
# Parameter construction (deterministic, synthetic) with constant folding
# -----------------------------------------------------------------------------

def _make_conv_params(key, K, Cin, Cout):
    k1, k2 = jax.random.split(key)
    w = jax.random.normal(k1, (K * K * Cin, Cout), jnp.float32) * (
        0.1 / (K * math.sqrt(Cin)))
    b = jax.random.normal(k2, (1, Cout), jnp.float32) * 0.01
    return w, b


def _pad_1x1_to_3x3(w, Cin):
    """Place 1x1 weights [Cin, Cout] at the center tap of a 3x3 tap-major
    [9*Cin, Cout] weight (zero elsewhere) -> mathematically identical conv."""
    if w.shape[0] == 9 * Cin:
        return w
    out = jnp.zeros((9 * Cin, w.shape[1]), w.dtype)
    return out.at[4 * Cin:5 * Cin, :].set(w)


def _make_flow_block_params(key, C, flow_steps, conv3x3_only, hidden_ratio):
    # Mirrors create_fast_flow_block: AllInOneBlock per step, permute_soft=False
    C1 = C - C // 2
    C2 = C // 2
    hidden = int(C1 * hidden_ratio)
    # AllInOneBlock global affine init (global_affine_init=1.0, SOFTPLUS type)
    gs_param = 2.0 * math.log(math.exp(0.5 * 10.0 * 1.0) - 1.0)
    gs_act = 0.1 * 2.0 * math.log1p(math.exp(0.5 * gs_param))   # per-channel
    # log-Jacobian constant uses the UNFOLDED global scale
    log_scale_sum = C * math.log(gs_act)
    steps = []
    for i in range(flow_steps):
        key, k_w1, k_w2, k_perm = jax.random.split(key, 4)
        K = 1 if (i % 2 == 1 and not conv3x3_only) else 3
        w1, b1 = _make_conv_params(k_w1, K, C1, hidden)
        w2, b2 = _make_conv_params(k_w2, K, hidden, 2 * C2)
        # fold the AllInOneBlock "a *= 0.1" into the second subnet conv
        w2 = 0.1 * w2
        b2 = 0.1 * b2
        # hard channel permutation: out[:, j] = in[:, perm[j]]  ==  in @ pT
        perm = jax.random.permutation(k_perm, C)
        pT = jnp.zeros((C, C), jnp.float32).at[perm, jnp.arange(C)].set(1.0)
        # fold the global affine scale into the permutation matmul.
        # TODO(synk): a checkpoint's nonzero global offset would need a
        #             folded additive term re-added here.
        M = gs_act * pT                           # diag(gs) @ pT  (f32)
        steps.append(dict(
            K=K,
            w1=w1.astype(jnp.bfloat16), b1=b1,
            w2=w2.astype(jnp.bfloat16), b2=b2,
            m1=M[:C1, :], m2=M[C1:, :]))
    return steps, hidden, log_scale_sum


def build_fastflow_params(key, input_size, channels, scales, flow_steps,
                          conv3x3_only, hidden_ratio):
    per_scale = []
    for C, scale in zip(channels, scales):
        H = input_size[0] // scale
        W = input_size[1] // scale
        C1 = C - C // 2
        key, k_proj, k_flow = jax.random.split(key, 3)
        cin_proj = 3 * scale * scale
        pw, pb = _make_conv_params(k_proj, 1, cin_proj, C)
        steps, hidden, log_scale_sum = _make_flow_block_params(
            k_flow, C, flow_steps, conv3x3_only, hidden_ratio)
        # stacked, uniform-shape per-step weights for streaming (1x1 -> 3x3)
        w1s = jnp.stack([_pad_1x1_to_3x3(st['w1'], C1) for st in steps])
        b1s = jnp.stack([st['b1'] for st in steps])
        w2s = jnp.stack([_pad_1x1_to_3x3(st['w2'], hidden) for st in steps])
        b2s = jnp.stack([st['b2'] for st in steps])
        m1s = jnp.stack([st['m1'] for st in steps])
        m2s = jnp.stack([st['m2'] for st in steps])
        per_scale.append(dict(
            scale=scale, C=C, H=H, W=W, hidden=hidden,
            proj_w=pw.astype(jnp.bfloat16), proj_b=pb,
            w1s=w1s, b1s=b1s, w2s=w2s, b2s=b2s, m1s=m1s, m2s=m2s,
            steps=steps,                    # per-step originals (reference)
            log_scale_sum=log_scale_sum))
    return per_scale


# -----------------------------------------------------------------------------
# Forward pass (training mode): (hidden_variables, log_jacobians)
# -----------------------------------------------------------------------------

def _space_to_depth(x_nchw, H, W, scale):
    B = x_nchw.shape[0]
    xr = x_nchw.reshape(B, 3, H, scale, W, scale)
    return jnp.transpose(xr, (0, 2, 4, 1, 3, 5)).reshape(
        B, H * W, 3 * scale * scale)


def fastflow_forward(x_nchw, params, clamp=2.0):
    B = x_nchw.shape[0]
    hidden_variables = []
    log_jacobians = []
    for sp in params:
        scale, C, H, W = sp['scale'], sp['C'], sp['H'], sp['W']
        x_s2d = _space_to_depth(x_nchw, H, W, scale).astype(jnp.bfloat16)
        z, jac = fused_scale_forward(x_s2d, sp, clamp=clamp)
        n_steps = sp['w1s'].shape[0]
        log_jac = jac[:, 0, 0] + (H * W) * sp['log_scale_sum'] * n_steps
        hidden_variables.append(jnp.transpose(z.reshape(B, H, W, C),
                                              (0, 3, 1, 2)))   # NCHW like torch
        log_jacobians.append(log_jac)
    return hidden_variables, log_jacobians


# -----------------------------------------------------------------------------
# Plain-JAX reference of the same math (f32) for validation
# -----------------------------------------------------------------------------

def _ref_conv_same(x_bnc, w, b, K, H, W, relu):
    B, HW, Cin = x_bnc.shape
    xh = x_bnc.reshape(B, H, W, Cin)
    pad = (K - 1) // 2
    xp = jnp.pad(xh, ((0, 0), (pad, pad), (pad, pad), (0, 0)))
    taps = [xp[:, dy:dy + H, dx:dx + W, :].reshape(B, HW, Cin)
            for dy in range(K) for dx in range(K)]
    patches = jnp.concatenate(taps, axis=-1)
    out = jnp.einsum('bnk,ko->bno', patches, w) + b
    if relu:
        out = jnp.maximum(out, 0.0)
    return out


def reference_scale_forward(x_s2d, sp, clamp, eps=1e-5):
    f32 = jnp.float32
    H, W, C = sp['H'], sp['W'], sp['C']
    C2 = C // 2
    C1 = C - C2
    x = x_s2d.astype(f32)
    feat = jnp.einsum('bnk,kc->bnc', x, sp['proj_w'].astype(f32)) + sp['proj_b']
    mean = jnp.mean(feat, axis=(1, 2), keepdims=True)
    var = jnp.mean((feat - mean) ** 2, axis=(1, 2), keepdims=True)
    z = (feat - mean) * jax.lax.rsqrt(var + eps)
    jac = jnp.zeros((x.shape[0],), f32)
    for st in sp['steps']:
        K = st['K']
        x1, x2 = z[..., :C1], z[..., C1:]
        h = _ref_conv_same(x1, st['w1'].astype(f32), st['b1'], K, H, W, True)
        a = _ref_conv_same(h, st['w2'].astype(f32), st['b2'], K, H, W, False)
        s = clamp * jnp.tanh(a[..., :C2])
        t = a[..., C2:]
        y2 = x2 * jnp.exp(s) + t
        jac = jac + jnp.sum(s, axis=(1, 2))
        z = (jnp.einsum('bnc,cd->bnd', x1, st['m1'])
             + jnp.einsum('bnc,cd->bnd', y2, st['m2']))
    return z, jac


# -----------------------------------------------------------------------------
# Main
# -----------------------------------------------------------------------------

if __name__ == "__main__":
    key = jax.random.PRNGKey(0)
    k_in, k_params = jax.random.split(key)

    B = 2
    input_size = (32, 32)
    channels = [16, 32]   # small synthetic stand-ins for resnet feature channels
    scales = [4, 8]
    flow_steps = 2
    conv3x3_only = False
    hidden_ratio = 1.0
    clamp = 2.0

    x = jax.random.normal(k_in, (B, 3, input_size[0], input_size[1]),
                          jnp.float32)  # NCHW, like the PyTorch module input

    params = build_fastflow_params(k_params, input_size, channels, scales,
                                   flow_steps, conv3x3_only, hidden_ratio)

    hidden_variables, log_jacobians = fastflow_forward(x, params, clamp=clamp)
    for hv, lj in zip(hidden_variables, log_jacobians):
        jax.block_until_ready(hv)
        jax.block_until_ready(lj)

    # validate against the plain-JAX f32 reference (loose tol: bf16 MXU inputs)
    for sp, hv, lj in zip(params, hidden_variables, log_jacobians):
        scale, C, H, W = sp['scale'], sp['C'], sp['H'], sp['W']
        x_s2d = _space_to_depth(x, H, W, scale).astype(jnp.bfloat16)
        z_r, jac_r = reference_scale_forward(x_s2d, sp, clamp)
        hv_r = jnp.transpose(z_r.reshape(B, H, W, C), (0, 3, 1, 2))
        lj_r = jac_r + (H * W) * sp['log_scale_sum'] * len(sp['steps'])

        assert hv.shape == (B, C, H, W) and lj.shape == (B,)
        assert bool(jnp.all(jnp.isfinite(hv))) and bool(jnp.all(jnp.isfinite(lj)))
        err_z = float(jnp.max(jnp.abs(hv - hv_r)))
        err_j = float(jnp.max(jnp.abs(lj - lj_r)))
        assert err_z < 1.5e-1, f"hidden-variable mismatch: {err_z}"
        assert err_j < 5e-2, f"log-jacobian mismatch: {err_j}"

    print("KERNEL_OK")
</pallas_src>

<mosaic_0001>
module attributes {stable_mosaic.version = 11 : i64} {
  func.func @_fused_scale_kernel(%arg0: i32, %arg1: i32, %arg2: memref<1x64x48xbf16, #tpu.memory_space<vmem>>, %arg3: memref<48x16xbf16, #tpu.memory_space<vmem>>, %arg4: memref<1x16xf32, #tpu.memory_space<vmem>>, %arg5: memref<1x72x8xbf16, #tpu.memory_space<vmem>>, %arg6: memref<1x1x8xf32, #tpu.memory_space<vmem>>, %arg7: memref<1x72x16xbf16, #tpu.memory_space<vmem>>, %arg8: memref<1x1x16xf32, #tpu.memory_space<vmem>>, %arg9: memref<1x8x16xf32, #tpu.memory_space<vmem>>, %arg10: memref<1x8x16xf32, #tpu.memory_space<vmem>>, %arg11: memref<1x64x16xf32, #tpu.memory_space<vmem>>, %arg12: memref<1x1x1xf32, #tpu.memory_space<vmem>>, %arg13: memref<64x16xf32, #tpu.memory_space<vmem>>, %arg14: memref<1x1xf32, #tpu.memory_space<vmem>>, %arg15: memref<10x10x8xf32, #tpu.memory_space<vmem>>, %arg16: memref<10x10x8xf32, #tpu.memory_space<vmem>>) attributes {dimension_semantics = [#tpu.dimension_semantics<parallel>, #tpu.dimension_semantics<arbitrary>], iteration_bounds = array<i64: 2, 2>, scalar_prefetch = 0 : i64, scratch_operands = 4 : i64, tpu.core_type = #tpu.core_type<tc>, window_params = [{transform_indices = @transform_0, window_bounds = array<i64: 1, 64, 48>}, {pipeline_mode = #tpu.pipeline_mode<synchronous>, transform_indices = @transform_1, window_bounds = array<i64: 48, 16>}, {pipeline_mode = #tpu.pipeline_mode<synchronous>, transform_indices = @transform_2, window_bounds = array<i64: 1, 16>}, {transform_indices = @transform_3, window_bounds = array<i64: 1, 72, 8>}, {transform_indices = @transform_4, window_bounds = array<i64: 1, 1, 8>}, {transform_indices = @transform_5, window_bounds = array<i64: 1, 72, 16>}, {transform_indices = @transform_6, window_bounds = array<i64: 1, 1, 16>}, {transform_indices = @transform_7, window_bounds = array<i64: 1, 8, 16>}, {transform_indices = @transform_8, window_bounds = array<i64: 1, 8, 16>}, {transform_indices = @transform_9, window_bounds = array<i64: 1, 64, 16>}, {transform_indices = @transform_10, window_bounds = array<i64: 1, 1, 1>}]} {
    %c0_i32 = arith.constant 0 : i32
    %0 = arith.cmpi eq, %arg1, %c0_i32 : i32
    %1 = arith.extui %0 : i1 to i32
    %c0_i32_0 = arith.constant 0 : i32
    %2 = arith.cmpi ne, %1, %c0_i32_0 : i32
    scf.if %2 {
      %cst_102 = arith.constant 0.000000e+00 : f32
      %152 = vector.broadcast %cst_102 : f32 to vector<10x10x8xf32>
      %c0_103 = arith.constant 0 : index
      %c0_104 = arith.constant 0 : index
      %c0_105 = arith.constant 0 : index
      %153 = vector.load %arg15[%c0_103, %c0_104, %c0_105] : memref<10x10x8xf32, #tpu.memory_space<vmem>>, vector<10x10x8xf32>
      tpu.vector_store %arg15[%c0_103, %c0_104, %c0_105], %152 {strides = array<i32>} : memref<10x10x8xf32, #tpu.memory_space<vmem>>, vector<10x10x8xf32>,
      %cst_106 = arith.constant 0.000000e+00 : f32
      %154 = vector.broadcast %cst_106 : f32 to vector<10x10x8xf32>
      %c0_107 = arith.constant 0 : index
      %c0_108 = arith.constant 0 : index
      %c0_109 = arith.constant 0 : index
      %155 = vector.load %arg16[%c0_107, %c0_108, %c0_109] : memref<10x10x8xf32, #tpu.memory_space<vmem>>, vector<10x10x8xf32>
      tpu.vector_store %arg16[%c0_107, %c0_108, %c0_109], %154 {strides = array<i32>} : memref<10x10x8xf32, #tpu.memory_space<vmem>>, vector<10x10x8xf32>,
      %c0_110 = arith.constant 0 : index
      %c0_111 = arith.constant 0 : index
      %c0_112 = arith.constant 0 : index
      %156 = vector.load %arg2[%c0_110, %c0_111, %c0_112] : memref<1x64x48xbf16, #tpu.memory_space<vmem>>, vector<1x64x48xbf16>
      %157 = vector.shape_cast %156 : vector<1x64x48xbf16> to vector<64x48xbf16>
      %c0_113 = arith.constant 0 : index
      %c0_114 = arith.constant 0 : index
      %158 = vector.load %arg3[%c0_113, %c0_114] : memref<48x16xbf16, #tpu.memory_space<vmem>>, vector<48x16xbf16>
      %cst_115 = arith.constant dense<0.000000e+00> : vector<64x16xf32>
      %159 = tpu.matmul %157, %158, %cst_115 {dimension_numbers = #tpu.dot_dimension_numbers<[1], [0], [0], [1], [0, 0, 1, 1], [], []>} : vector<64x48xbf16>, vector<48x16xbf16>, vector<64x16xf32> -> vector<64x16xf32>
      %c0_116 = arith.constant 0 : index
      %c0_117 = arith.constant 0 : index
      %160 = vector.load %arg4[%c0_116, %c0_117] : memref<1x16xf32, #tpu.memory_space<vmem>>, vector<1x16xf32>
      %161 = vector.broadcast %160 : vector<1x16xf32> to vector<64x16xf32>
      %162 = arith.addf %159, %161 : vector<64x16xf32>
      %cst_118 = arith.constant dense<0.000000e+00> : vector<64xf32>
      %163 = vector.multi_reduction <add>, %162, %cst_118 [1] : vector<64x16xf32> to vector<64xf32>
      %164 = vector.shape_cast %163 : vector<64xf32> to vector<64x1xf32>
      %cst_119 = arith.constant 1.600000e+01 : f32
      %165 = vector.broadcast %cst_119 : f32 to vector<64x1xf32>
      %166 = arith.divf %164, %165 : vector<64x1xf32>
      %cst_120 = arith.constant dense<0.000000e+00> : vector<1xf32>
      %167 = vector.multi_reduction <add>, %166, %cst_120 [0] : vector<64x1xf32> to vector<1xf32>
      %168 = vector.shape_cast %167 : vector<1xf32> to vector<1x1xf32>
      %cst_121 = arith.constant 6.400000e+01 : f32
      %169 = vector.broadcast %cst_121 : f32 to vector<1x1xf32>
      %170 = arith.divf %168, %169 : vector<1x1xf32>
      %171 = vector.broadcast %170 : vector<1x1xf32> to vector<64x16xf32>
      %172 = arith.subf %162, %171 : vector<64x16xf32>
      %173 = arith.mulf %172, %172 : vector<64x16xf32>
      %cst_122 = arith.constant dense<0.000000e+00> : vector<64xf32>
      %174 = vector.multi_reduction <add>, %173, %cst_122 [1] : vector<64x16xf32> to vector<64xf32>
      %175 = vector.shape_cast %174 : vector<64xf32> to vector<64x1xf32>
      %cst_123 = arith.constant 1.600000e+01 : f32
      %176 = vector.broadcast %cst_123 : f32 to vector<64x1xf32>
      %177 = arith.divf %175, %176 : vector<64x1xf32>
      %cst_124 = arith.constant dense<0.000000e+00> : vector<1xf32>
      %178 = vector.multi_reduction <add>, %177, %cst_124 [0] : vector<64x1xf32> to vector<1xf32>
      %179 = vector.shape_cast %178 : vector<1xf32> to vector<1x1xf32>
      %cst_125 = arith.constant 6.400000e+01 : f32
      %180 = vector.broadcast %cst_125 : f32 to vector<1x1xf32>
      %181 = arith.divf %179, %180 : vector<1x1xf32>
      %cst_126 = arith.constant 9.99999974E-6 : f32
      %182 = vector.broadcast %cst_126 : f32 to vector<1x1xf32>
      %183 = arith.addf %181, %182 : vector<1x1xf32>
      %184 = math.rsqrt %183 : vector<1x1xf32>
      %185 = vector.broadcast %184 : vector<1x1xf32> to vector<64x16xf32>
      %186 = arith.mulf %172, %185 : vector<64x16xf32>
      %c0_127 = arith.constant 0 : index
      %c0_128 = arith.constant 0 : index
      %187 = vector.load %arg13[%c0_127, %c0_128] : memref<64x16xf32, #tpu.memory_space<vmem>>, vector<64x16xf32>
      tpu.vector_store %arg13[%c0_127, %c0_128], %186 {strides = array<i32>} : memref<64x16xf32, #tpu.memory_space<vmem>>, vector<64x16xf32>,
      %cst_129 = arith.constant 0.000000e+00 : f32
      %188 = vector.broadcast %cst_129 : f32 to vector<1x1xf32>
      %c0_130 = arith.constant 0 : index
      %c0_131 = arith.constant 0 : index
      %189 = vector.load %arg14[%c0_130, %c0_131] : memref<1x1xf32, #tpu.memory_space<vmem>>, vector<1x1xf32>
      tpu.vector_store %arg14[%c0_130, %c0_131], %188 {strides = array<i32>} : memref<1x1xf32, #tpu.memory_space<vmem>>, vector<1x1xf32>,
    } else {
    }
    %c0 = arith.constant 0 : index
    %c0_1 = arith.constant 0 : index
    %3 = vector.load %arg13[%c0, %c0_1] : memref<64x16xf32, #tpu.memory_space<vmem>>, vector<64x16xf32>
    %4 = vector.extract_strided_slice %3 {offsets = [0, 0], sizes = [64, 8], strides = [1, 1]} : vector<64x16xf32> to vector<64x8xf32>
    %5 = vector.extract_strided_slice %3 {offsets = [0, 8], sizes = [64, 8], strides = [1, 1]} : vector<64x16xf32> to vector<64x8xf32>
    %c0_2 = arith.constant 0 : index
    %c0_3 = arith.constant 0 : index
    %c0_4 = arith.constant 0 : index
    %6 = vector.load %arg5[%c0_2, %c0_3, %c0_4] : memref<1x72x8xbf16, #tpu.memory_space<vmem>>, vector<1x72x8xbf16>
    %7 = vector.shape_cast %6 : vector<1x72x8xbf16> to vector<72x8xbf16>
    %c0_5 = arith.constant 0 : index
    %c0_6 = arith.constant 0 : index
    %c0_7 = arith.constant 0 : index
    %8 = vector.load %arg6[%c0_5, %c0_6, %c0_7] : memref<1x1x8xf32, #tpu.memory_space<vmem>>, vector<1x1x8xf32>
    %9 = vector.shape_cast %8 : vector<1x1x8xf32> to vector<1x8xf32>
    %10 = vector.shape_cast %4 : vector<64x8xf32> to vector<8x8x8xf32>
    %c1 = arith.constant 1 : index
    %c1_8 = arith.constant 1 : index
    %c0_9 = arith.constant 0 : index
    %11 = vector.load %arg15[%c1, %c1_8, %c0_9] : memref<10x10x8xf32, #tpu.memory_space<vmem>>, vector<8x8x8xf32>
    tpu.vector_store %arg15[%c1, %c1_8, %c0_9], %10 {strides = array<i32>} : memref<10x10x8xf32, #tpu.memory_space<vmem>>, vector<8x8x8xf32>,
    %c0_10 = arith.constant 0 : index
    %c0_11 = arith.constant 0 : index
    %c0_12 = arith.constant 0 : index
    %12 = vector.load %arg15[%c0_10, %c0_11, %c0_12] : memref<10x10x8xf32, #tpu.memory_space<vmem>>, vector<8x8x8xf32>
    %13 = vector.shape_cast %12 : vector<8x8x8xf32> to vector<64x8xf32>
    %14 = arith.truncf %13 : vector<64x8xf32> to vector<64x8xbf16>
    %15 = vector.extract_strided_slice %7 {offsets = [0, 0], sizes = [8, 8], strides = [1, 1]} : vector<72x8xbf16> to vector<8x8xbf16>
    %cst = arith.constant dense<0.000000e+00> : vector<64x8xf32>
    %16 = tpu.matmul %14, %15, %cst {dimension_numbers = #tpu.dot_dimension_numbers<[1], [0], [0], [1], [0, 0, 1, 1], [], []>} : vector<64x8xbf16>, vector<8x8xbf16>, vector<64x8xf32> -> vector<64x8xf32>
    %c0_13 = arith.constant 0 : index
    %c1_14 = arith.constant 1 : index
    %c0_15 = arith.constant 0 : index
    %17 = vector.load %arg15[%c0_13, %c1_14, %c0_15] : memref<10x10x8xf32, #tpu.memory_space<vmem>>, vector<8x8x8xf32>
    %18 = vector.shape_cast %17 : vector<8x8x8xf32> to vector<64x8xf32>
    %19 = arith.truncf %18 : vector<64x8xf32> to vector<64x8xbf16>
    %20 = vector.extract_strided_slice %7 {offsets = [8, 0], sizes = [8, 8], strides = [1, 1]} : vector<72x8xbf16> to vector<8x8xbf16>
    %cst_16 = arith.constant dense<0.000000e+00> : vector<64x8xf32>
    %21 = tpu.matmul %19, %20, %cst_16 {dimension_numbers = #tpu.dot_dimension_numbers<[1], [0], [0], [1], [0, 0, 1, 1], [], []>} : vector<64x8xbf16>, vector<8x8xbf16>, vector<64x8xf32> -> vector<64x8xf32>
    %22 = arith.addf %16, %21 : vector<64x8xf32>
    %c0_17 = arith.constant 0 : index
    %c2 = arith.constant 2 : index
    %c0_18 = arith.constant 0 : index
    %23 = vector.load %arg15[%c0_17, %c2, %c0_18] : memref<10x10x8xf32, #tpu.memory_space<vmem>>, vector<8x8x8xf32>
    %24 = vector.shape_cast %23 : vector<8x8x8xf32> to vector<64x8xf32>
    %25 = arith.truncf %24 : vector<64x8xf32> to vector<64x8xbf16>
    %26 = vector.extract_strided_slice %7 {offsets = [16, 0], sizes = [8, 8], strides = [1, 1]} : vector<72x8xbf16> to vector<8x8xbf16>
    %cst_19 = arith.constant dense<0.000000e+00> : vector<64x8xf32>
    %27 = tpu.matmul %25, %26, %cst_19 {dimension_numbers = #tpu.dot_dimension_numbers<[1], [0], [0], [1], [0, 0, 1, 1], [], []>} : vector<64x8xbf16>, vector<8x8xbf16>, vector<64x8xf32> -> vector<64x8xf32>
    %28 = arith.addf %22, %27 : vector<64x8xf32>
    %c1_20 = arith.constant 1 : index
    %c0_21 = arith.constant 0 : index
    %c0_22 = arith.constant 0 : index
    %29 = vector.load %arg15[%c1_20, %c0_21, %c0_22] : memref<10x10x8xf32, #tpu.memory_space<vmem>>, vector<8x8x8xf32>
    %30 = vector.shape_cast %29 : vector<8x8x8xf32> to vector<64x8xf32>
    %31 = arith.truncf %30 : vector<64x8xf32> to vector<64x8xbf16>
    %32 = vector.extract_strided_slice %7 {offsets = [24, 0], sizes = [8, 8], strides = [1, 1]} : vector<72x8xbf16> to vector<8x8xbf16>
    %cst_23 = arith.constant dense<0.000000e+00> : vector<64x8xf32>
    %33 = tpu.matmul %31, %32, %cst_23 {dimension_numbers = #tpu.dot_dimension_numbers<[1], [0], [0], [1], [0, 0, 1, 1], [], []>} : vector<64x8xbf16>, vector<8x8xbf16>, vector<64x8xf32> -> vector<64x8xf32>
    %34 = arith.addf %28, %33 : vector<64x8xf32>
    %35 = arith.truncf %4 : vector<64x8xf32> to vector<64x8xbf16>
    %36 = vector.extract_strided_slice %7 {offsets = [32, 0], sizes = [8, 8], strides = [1, 1]} : vector<72x8xbf16> to vector<8x8xbf16>
    %cst_24 = arith.constant dense<0.000000e+00> : vector<64x8xf32>
    %37 = tpu.matmul %35, %36, %cst_24 {dimension_numbers = #tpu.dot_dimension_numbers<[1], [0], [0], [1], [0, 0, 1, 1], [], []>} : vector<64x8xbf16>, vector<8x8xbf16>, vector<64x8xf32> -> vector<64x8xf32>
    %38 = arith.addf %34, %37 : vector<64x8xf32>
    %c1_25 = arith.constant 1 : index
    %c2_26 = arith.constant 2 : index
    %c0_27 = arith.constant 0 : index
    %39 = vector.load %arg15[%c1_25, %c2_26, %c0_27] : memref<10x10x8xf32, #tpu.memory_space<vmem>>, vector<8x8x8xf32>
    %40 = vector.shape_cast %39 : vector<8x8x8xf32> to vector<64x8xf32>
    %41 = arith.truncf %40 : vector<64x8xf32> to vector<64x8xbf16>
    %42 = vector.extract_strided_slice %7 {offsets = [40, 0], sizes = [8, 8], strides = [1, 1]} : vector<72x8xbf16> to vector<8x8xbf16>
    %cst_28 = arith.constant dense<0.000000e+00> : vector<64x8xf32>
    %43 = tpu.matmul %41, %42, %cst_28 {dimension_numbers = #tpu.dot_dimension_numbers<[1], [0], [0], [1], [0, 0, 1, 1], [], []>} : vector<64x8xbf16>, vector<8x8xbf16>, vector<64x8xf32> -> vector<64x8xf32>
    %44 = arith.addf %38, %43 : vector<64x8xf32>
    %c2_29 = arith.constant 2 : index
    %c0_30 = arith.constant 0 : index
    %c0_31 = arith.constant 0 : index
    %45 = vector.load %arg15[%c2_29, %c0_30, %c0_31] : memref<10x10x8xf32, #tpu.memory_space<vmem>>, vector<8x8x8xf32>
    %46 = vector.shape_cast %45 : vector<8x8x8xf32> to vector<64x8xf32>
    %47 = arith.truncf %46 : vector<64x8xf32> to vector<64x8xbf16>
    %48 = vector.extract_strided_slice %7 {offsets = [48, 0], sizes = [8, 8], strides = [1, 1]} : vector<72x8xbf16> to vector<8x8xbf16>
    %cst_32 = arith.constant dense<0.000000e+00> : vector<64x8xf32>
    %49 = tpu.matmul %47, %48, %cst_32 {dimension_numbers = #tpu.dot_dimension_numbers<[1], [0], [0], [1], [0, 0, 1, 1], [], []>} : vector<64x8xbf16>, vector<8x8xbf16>, vector<64x8xf32> -> vector<64x8xf32>
    %50 = arith.addf %44, %49 : vector<64x8xf32>
    %c2_33 = arith.constant 2 : index
    %c1_34 = arith.constant 1 : index
    %c0_35 = arith.constant 0 : index
    %51 = vector.load %arg15[%c2_33, %c1_34, %c0_35] : memref<10x10x8xf32, #tpu.memory_space<vmem>>, vector<8x8x8xf32>
    %52 = vector.shape_cast %51 : vector<8x8x8xf32> to vector<64x8xf32>
    %53 = arith.truncf %52 : vector<64x8xf32> to vector<64x8xbf16>
    %54 = vector.extract_strided_slice %7 {offsets = [56, 0], sizes = [8, 8], strides = [1, 1]} : vector<72x8xbf16> to vector<8x8xbf16>
    %cst_36 = arith.constant dense<0.000000e+00> : vector<64x8xf32>
    %55 = tpu.matmul %53, %54, %cst_36 {dimension_numbers = #tpu.dot_dimension_numbers<[1], [0], [0], [1], [0, 0, 1, 1], [], []>} : vector<64x8xbf16>, vector<8x8xbf16>, vector<64x8xf32> -> vector<64x8xf32>
    %56 = arith.addf %50, %55 : vector<64x8xf32>
    %c2_37 = arith.constant 2 : index
    %c2_38 = arith.constant 2 : index
    %c0_39 = arith.constant 0 : index
    %57 = vector.load %arg15[%c2_37, %c2_38, %c0_39] : memref<10x10x8xf32, #tpu.memory_space<vmem>>, vector<8x8x8xf32>
    %58 = vector.shape_cast %57 : vector<8x8x8xf32> to vector<64x8xf32>
    %59 = arith.truncf %58 : vector<64x8xf32> to vector<64x8xbf16>
    %60 = vector.extract_strided_slice %7 {offsets = [64, 0], sizes = [8, 8], strides = [1, 1]} : vector<72x8xbf16> to vector<8x8xbf16>
    %cst_40 = arith.constant dense<0.000000e+00> : vector<64x8xf32>
    %61 = tpu.matmul %59, %60, %cst_40 {dimension_numbers = #tpu.dot_dimension_numbers<[1], [0], [0], [1], [0, 0, 1, 1], [], []>} : vector<64x8xbf16>, vector<8x8xbf16>, vector<64x8xf32> -> vector<64x8xf32>
    %62 = arith.addf %56, %61 : vector<64x8xf32>
    %63 = vector.broadcast %9 : vector<1x8xf32> to vector<64x8xf32>
    %64 = arith.addf %62, %63 : vector<64x8xf32>
    %cst_41 = arith.constant 0.000000e+00 : f32
    %65 = vector.broadcast %cst_41 : f32 to vector<64x8xf32>
    %66 = arith.maximumf %64, %65 : vector<64x8xf32>
    %c0_42 = arith.constant 0 : index
    %c0_43 = arith.constant 0 : index
    %c0_44 = arith.constant 0 : index
    %67 = vector.load %arg7[%c0_42, %c0_43, %c0_44] : memref<1x72x16xbf16, #tpu.memory_space<vmem>>, vector<1x72x16xbf16>
    %68 = vector.shape_cast %67 : vector<1x72x16xbf16> to vector<72x16xbf16>
    %c0_45 = arith.constant 0 : index
    %c0_46 = arith.constant 0 : index
    %c0_47 = arith.constant 0 : index
    %69 = vector.load %arg8[%c0_45, %c0_46, %c0_47] : memref<1x1x16xf32, #tpu.memory_space<vmem>>, vector<1x1x16xf32>
    %70 = vector.shape_cast %69 : vector<1x1x16xf32> to vector<1x16xf32>
    %71 = vector.shape_cast %66 : vector<64x8xf32> to vector<8x8x8xf32>
    %c1_48 = arith.constant 1 : index
    %c1_49 = arith.constant 1 : index
    %c0_50 = arith.constant 0 : index
    %72 = vector.load %arg16[%c1_48, %c1_49, %c0_50] : memref<10x10x8xf32, #tpu.memory_space<vmem>>, vector<8x8x8xf32>
    tpu.vector_store %arg16[%c1_48, %c1_49, %c0_50], %71 {strides = array<i32>} : memref<10x10x8xf32, #tpu.memory_space<vmem>>, vector<8x8x8xf32>,
    %c0_51 = arith.constant 0 : index
    %c0_52 = arith.constant 0 : index
    %c0_53 = arith.constant 0 : index
    %73 = vector.load %arg16[%c0_51, %c0_52, %c0_53] : memref<10x10x8xf32, #tpu.memory_space<vmem>>, vector<8x8x8xf32>
    %74 = vector.shape_cast %73 : vector<8x8x8xf32> to vector<64x8xf32>
    %75 = arith.truncf %74 : vector<64x8xf32> to vector<64x8xbf16>
    %76 = vector.extract_strided_slice %68 {offsets = [0, 0], sizes = [8, 16], strides = [1, 1]} : vector<72x16xbf16> to vector<8x16xbf16>
    %cst_54 = arith.constant dense<0.000000e+00> : vector<64x16xf32>
    %77 = tpu.matmul %75, %76, %cst_54 {dimension_numbers = #tpu.dot_dimension_numbers<[1], [0], [0], [1], [0, 0, 1, 1], [], []>} : vector<64x8xbf16>, vector<8x16xbf16>, vector<64x16xf32> -> vector<64x16xf32>
    %c0_55 = arith.constant 0 : index
    %c1_56 = arith.constant 1 : index
    %c0_57 = arith.constant 0 : index
    %78 = vector.load %arg16[%c0_55, %c1_56, %c0_57] : memref<10x10x8xf32, #tpu.memory_space<vmem>>, vector<8x8x8xf32>
    %79 = vector.shape_cast %78 : vector<8x8x8xf32> to vector<64x8xf32>
    %80 = arith.truncf %79 : vector<64x8xf32> to vector<64x8xbf16>
    %81 = vector.extract_strided_slice %68 {offsets = [8, 0], sizes = [8, 16], strides = [1, 1]} : vector<72x16xbf16> to vector<8x16xbf16>
    %cst_58 = arith.constant dense<0.000000e+00> : vector<64x16xf32>
    %82 = tpu.matmul %80, %81, %cst_58 {dimension_numbers = #tpu.dot_dimension_numbers<[1], [0], [0], [1], [0, 0, 1, 1], [], []>} : vector<64x8xbf16>, vector<8x16xbf16>, vector<64x16xf32> -> vector<64x16xf32>
    %83 = arith.addf %77, %82 : vector<64x16xf32>
    %c0_59 = arith.constant 0 : index
    %c2_60 = arith.constant 2 : index
    %c0_61 = arith.constant 0 : index
    %84 = vector.load %arg16[%c0_59, %c2_60, %c0_61] : memref<10x10x8xf32, #tpu.memory_space<vmem>>, vector<8x8x8xf32>
    %85 = vector.shape_cast %84 : vector<8x8x8xf32> to vector<64x8xf32>
    %86 = arith.truncf %85 : vector<64x8xf32> to vector<64x8xbf16>
    %87 = vector.extract_strided_slice %68 {offsets = [16, 0], sizes = [8, 16], strides = [1, 1]} : vector<72x16xbf16> to vector<8x16xbf16>
    %cst_62 = arith.constant dense<0.000000e+00> : vector<64x16xf32>
    %88 = tpu.matmul %86, %87, %cst_62 {dimension_numbers = #tpu.dot_dimension_numbers<[1], [0], [0], [1], [0, 0, 1, 1], [], []>} : vector<64x8xbf16>, vector<8x16xbf16>, vector<64x16xf32> -> vector<64x16xf32>
    %89 = arith.addf %83, %88 : vector<64x16xf32>
    %c1_63 = arith.constant 1 : index
    %c0_64 = arith.constant 0 : index
    %c0_65 = arith.constant 0 : index
    %90 = vector.load %arg16[%c1_63, %c0_64, %c0_65] : memref<10x10x8xf32, #tpu.memory_space<vmem>>, vector<8x8x8xf32>
    %91 = vector.shape_cast %90 : vector<8x8x8xf32> to vector<64x8xf32>
    %92 = arith.truncf %91 : vector<64x8xf32> to vector<64x8xbf16>
    %93 = vector.extract_strided_slice %68 {offsets = [24, 0], sizes = [8, 16], strides = [1, 1]} : vector<72x16xbf16> to vector<8x16xbf16>
    %cst_66 = arith.constant dense<0.000000e+00> : vector<64x16xf32>
    %94 = tpu.matmul %92, %93, %cst_66 {dimension_numbers = #tpu.dot_dimension_numbers<[1], [0], [0], [1], [0, 0, 1, 1], [], []>} : vector<64x8xbf16>, vector<8x16xbf16>, vector<64x16xf32> -> vector<64x16xf32>
    %95 = arith.addf %89, %94 : vector<64x16xf32>
    %96 = arith.truncf %66 : vector<64x8xf32> to vector<64x8xbf16>
    %97 = vector.extract_strided_slice %68 {offsets = [32, 0], sizes = [8, 16], strides = [1, 1]} : vector<72x16xbf16> to vector<8x16xbf16>
    %cst_67 = arith.constant dense<0.000000e+00> : vector<64x16xf32>
    %98 = tpu.matmul %96, %97, %cst_67 {dimension_numbers = #tpu.dot_dimension_numbers<[1], [0], [0], [1], [0, 0, 1, 1], [], []>} : vector<64x8xbf16>, vector<8x16xbf16>, vector<64x16xf32> -> vector<64x16xf32>
    %99 = arith.addf %95, %98 : vector<64x16xf32>
    %c1_68 = arith.constant 1 : index
    %c2_69 = arith.constant 2 : index
    %c0_70 = arith.constant 0 : index
    %100 = vector.load %arg16[%c1_68, %c2_69, %c0_70] : memref<10x10x8xf32, #tpu.memory_space<vmem>>, vector<8x8x8xf32>
    %101 = vector.shape_cast %100 : vector<8x8x8xf32> to vector<64x8xf32>
    %102 = arith.truncf %101 : vector<64x8xf32> to vector<64x8xbf16>
    %103 = vector.extract_strided_slice %68 {offsets = [40, 0], sizes = [8, 16], strides = [1, 1]} : vector<72x16xbf16> to vector<8x16xbf16>
    %cst_71 = arith.constant dense<0.000000e+00> : vector<64x16xf32>
    %104 = tpu.matmul %102, %103, %cst_71 {dimension_numbers = #tpu.dot_dimension_numbers<[1], [0], [0], [1], [0, 0, 1, 1], [], []>} : vector<64x8xbf16>, vector<8x16xbf16>, vector<64x16xf32> -> vector<64x16xf32>
    %105 = arith.addf %99, %104 : vector<64x16xf32>
    %c2_72 = arith.constant 2 : index
    %c0_73 = arith.constant 0 : index
    %c0_74 = arith.constant 0 : index
    %106 = vector.load %arg16[%c2_72, %c0_73, %c0_74] : memref<10x10x8xf32, #tpu.memory_space<vmem>>, vector<8x8x8xf32>
    %107 = vector.shape_cast %106 : vector<8x8x8xf32> to vector<64x8xf32>
    %108 = arith.truncf %107 : vector<64x8xf32> to vector<64x8xbf16>
    %109 = vector.extract_strided_slice %68 {offsets = [48, 0], sizes = [8, 16], strides = [1, 1]} : vector<72x16xbf16> to vector<8x16xbf16>
    %cst_75 = arith.constant dense<0.000000e+00> : vector<64x16xf32>
    %110 = tpu.matmul %108, %109, %cst_75 {dimension_numbers = #tpu.dot_dimension_numbers<[1], [0], [0], [1], [0, 0, 1, 1], [], []>} : vector<64x8xbf16>, vector<8x16xbf16>, vector<64x16xf32> -> vector<64x16xf32>
    %111 = arith.addf %105, %110 : vector<64x16xf32>
    %c2_76 = arith.constant 2 : index
    %c1_77 = arith.constant 1 : index
    %c0_78 = arith.constant 0 : index
    %112 = vector.load %arg16[%c2_76, %c1_77, %c0_78] : memref<10x10x8xf32, #tpu.memory_space<vmem>>, vector<8x8x8xf32>
    %113 = vector.shape_cast %112 : vector<8x8x8xf32> to vector<64x8xf32>
    %114 = arith.truncf %113 : vector<64x8xf32> to vector<64x8xbf16>
    %115 = vector.extract_strided_slice %68 {offsets = [56, 0], sizes = [8, 16], strides = [1, 1]} : vector<72x16xbf16> to vector<8x16xbf16>
    %cst_79 = arith.constant dense<0.000000e+00> : vector<64x16xf32>
    %116 = tpu.matmul %114, %115, %cst_79 {dimension_numbers = #tpu.dot_dimension_numbers<[1], [0], [0], [1], [0, 0, 1, 1], [], []>} : vector<64x8xbf16>, vector<8x16xbf16>, vector<64x16xf32> -> vector<64x16xf32>
    %117 = arith.addf %111, %116 : vector<64x16xf32>
    %c2_80 = arith.constant 2 : index
    %c2_81 = arith.constant 2 : index
    %c0_82 = arith.constant 0 : index
    %118 = vector.load %arg16[%c2_80, %c2_81, %c0_82] : memref<10x10x8xf32, #tpu.memory_space<vmem>>, vector<8x8x8xf32>
    %119 = vector.shape_cast %118 : vector<8x8x8xf32> to vector<64x8xf32>
    %120 = arith.truncf %119 : vector<64x8xf32> to vector<64x8xbf16>
    %121 = vector.extract_strided_slice %68 {offsets = [64, 0], sizes = [8, 16], strides = [1, 1]} : vector<72x16xbf16> to vector<8x16xbf16>
    %cst_83 = arith.constant dense<0.000000e+00> : vector<64x16xf32>
    %122 = tpu.matmul %120, %121, %cst_83 {dimension_numbers = #tpu.dot_dimension_numbers<[1], [0], [0], [1], [0, 0, 1, 1], [], []>} : vector<64x8xbf16>, vector<8x16xbf16>, vector<64x16xf32> -> vector<64x16xf32>
    %123 = arith.addf %117, %122 : vector<64x16xf32>
    %124 = vector.broadcast %70 : vector<1x16xf32> to vector<64x16xf32>
    %125 = arith.addf %123, %124 : vector<64x16xf32>
    %126 = vector.extract_strided_slice %125 {offsets = [0, 0], sizes = [64, 8], strides = [1, 1]} : vector<64x16xf32> to vector<64x8xf32>
    %127 = math.tanh %126 : vector<64x8xf32>
    %cst_84 = arith.constant 2.000000e+00 : f32
    %128 = vector.broadcast %cst_84 : f32 to vector<64x8xf32>
    %129 = arith.mulf %128, %127 : vector<64x8xf32>
    %130 = vector.extract_strided_slice %125 {offsets = [0, 8], sizes = [64, 8], strides = [1, 1]} : vector<64x16xf32> to vector<64x8xf32>
    %131 = math.exp %129 : vector<64x8xf32>
    %132 = arith.mulf %5, %131 : vector<64x8xf32>
    %133 = arith.addf %132, %130 : vector<64x8xf32>
    %c0_85 = arith.constant 0 : index
    %c0_86 = arith.constant 0 : index
    %134 = vector.load %arg14[%c0_85, %c0_86] : memref<1x1xf32, #tpu.memory_space<vmem>>, vector<1x1xf32>
    %cst_87 = arith.constant dense<0.000000e+00> : vector<64xf32>
    %135 = vector.multi_reduction <add>, %129, %cst_87 [1] : vector<64x8xf32> to vector<64xf32>
    %136 = vector.shape_cast %135 : vector<64xf32> to vector<64x1xf32>
    %cst_88 = arith.constant dense<0.000000e+00> : vector<1xf32>
    %137 = vector.multi_reduction <add>, %136, %cst_88 [0] : vector<64x1xf32> to vector<1xf32>
    %138 = vector.shape_cast %137 : vector<1xf32> to vector<1x1xf32>
    %139 = arith.addf %134, %138 : vector<1x1xf32>
    %c0_89 = arith.constant 0 : index
    %c0_90 = arith.constant 0 : index
    %140 = vector.load %arg14[%c0_89, %c0_90] : memref<1x1xf32, #tpu.memory_space<vmem>>, vector<1x1xf32>
    tpu.vector_store %arg14[%c0_89, %c0_90], %139 {strides = array<i32>} : memref<1x1xf32, #tpu.memory_space<vmem>>, vector<1x1xf32>,
    %c0_91 = arith.constant 0 : index
    %c0_92 = arith.constant 0 : index
    %c0_93 = arith.constant 0 : index
    %141 = vector.load %arg9[%c0_91, %c0_92, %c0_93] : memref<1x8x16xf32, #tpu.memory_space<vmem>>, vector<1x8x16xf32>
    %142 = vector.shape_cast %141 : vector<1x8x16xf32> to vector<8x16xf32>
    %cst_94 = arith.constant dense<0.000000e+00> : vector<64x16xf32>
    %143 = tpu.matmul %4, %142, %cst_94 {dimension_numbers = #tpu.dot_dimension_numbers<[1], [0], [0], [1], [0, 0, 1, 1], [], []>} : vector<64x8xf32>, vector<8x16xf32>, vector<64x16xf32> -> vector<64x16xf32>
    %c0_95 = arith.constant 0 : index
    %c0_96 = arith.constant 0 : index
    %c0_97 = arith.constant 0 : index
    %144 = vector.load %arg10[%c0_95, %c0_96, %c0_97] : memref<1x8x16xf32, #tpu.memory_space<vmem>>, vector<1x8x16xf32>
    %145 = vector.shape_cast %144 : vector<1x8x16xf32> to vector<8x16xf32>
    %cst_98 = arith.constant dense<0.000000e+00> : vector<64x16xf32>
    %146 = tpu.matmul %133, %145, %cst_98 {dimension_numbers = #tpu.dot_dimension_numbers<[1], [0], [0], [1], [0, 0, 1, 1], [], []>} : vector<64x8xf32>, vector<8x16xf32>, vector<64x16xf32> -> vector<64x16xf32>
    %147 = arith.addf %143, %146 : vector<64x16xf32>
    %c0_99 = arith.constant 0 : index
    %c0_100 = arith.constant 0 : index
    %148 = vector.load %arg13[%c0_99, %c0_100] : memref<64x16xf32, #tpu.memory_space<vmem>>, vector<64x16xf32>
    tpu.vector_store %arg13[%c0_99, %c0_100], %147 {strides = array<i32>} : memref<64x16xf32, #tpu.memory_space<vmem>>, vector<64x16xf32>,
    %c1_i32 = arith.constant 1 : i32
    %149 = arith.cmpi eq, %arg1, %c1_i32 : i32
    %150 = arith.extui %149 : i1 to i32
    %c0_i32_101 = arith.constant 0 : i32
    %151 = arith.cmpi ne, %150, %c0_i32_101 : i32
    scf.if %151 {
      %c0_102 = arith.constant 0 : index
      %c0_103 = arith.constant 0 : index
      %152 = vector.load %arg13[%c0_102, %c0_103] : memref<64x16xf32, #tpu.memory_space<vmem>>, vector<64x16xf32>
      %c0_104 = arith.constant 0 : index
      %c0_105 = arith.constant 0 : index
      %c0_106 = arith.constant 0 : index
      %153 = vector.load %arg11[%c0_104, %c0_105, %c0_106] : memref<1x64x16xf32, #tpu.memory_space<vmem>>, vector<1x64x16xf32>
      %154 = vector.shape_cast %153 : vector<1x64x16xf32> to vector<64x16xf32>
      %155 = vector.shape_cast %152 : vector<64x16xf32> to vector<1x64x16xf32>
      tpu.vector_store %arg11[%c0_104, %c0_105, %c0_106], %155 {strides = array<i32>} : memref<1x64x16xf32, #tpu.memory_space<vmem>>, vector<1x64x16xf32>,
      %c0_107 = arith.constant 0 : index
      %c0_108 = arith.constant 0 : index
      %156 = vector.load %arg14[%c0_107, %c0_108] : memref<1x1xf32, #tpu.memory_space<vmem>>, vector<1x1xf32>
      %157 = vector.shape_cast %156 : vector<1x1xf32> to vector<1x1x1xf32>
      %c0_109 = arith.constant 0 : index
      %c0_110 = arith.constant 0 : index
      %c0_111 = arith.constant 0 : index
      %158 = vector.load %arg12[%c0_109, %c0_110, %c0_111] : memref<1x1x1xf32, #tpu.memory_space<vmem>>, vector<1x1x1xf32>
      tpu.vector_store %arg12[%c0_109, %c0_110, %c0_111], %157 {strides = array<i32>} : memref<1x1x1xf32, #tpu.memory_space<vmem>>, vector<1x1x1xf32>,
    } else {
    }
    return
  }
  func.func @transform_0(%arg0: i32, %arg1: i32) -> (i32, i32, i32) {
    %c0_i32 = arith.constant 0 : i32
    %c0_i32_0 = arith.constant 0 : i32
    %c0_i32_1 = arith.constant 0 : i32
    return %arg0, %c0_i32, %c0_i32_0 : i32, i32, i32
  }
  func.func @transform_1(%arg0: i32, %arg1: i32) -> (i32, i32) {
    %c0_i32 = arith.constant 0 : i32
    %c0_i32_0 = arith.constant 0 : i32
    %c0_i32_1 = arith.constant 0 : i32
    return %c0_i32, %c0_i32_0 : i32, i32
  }
  func.func @transform_2(%arg0: i32, %arg1: i32) -> (i32, i32) {
    %c0_i32 = arith.constant 0 : i32
    %c0_i32_0 = arith.constant 0 : i32
    %c0_i32_1 = arith.constant 0 : i32
    return %c0_i32, %c0_i32_0 : i32, i32
  }
  func.func @transform_3(%arg0: i32, %arg1: i32) -> (i32, i32, i32) {
    %c0_i32 = arith.constant 0 : i32
    %c0_i32_0 = arith.constant 0 : i32
    %c0_i32_1 = arith.constant 0 : i32
    return %arg1, %c0_i32, %c0_i32_0 : i32, i32, i32
  }
  func.func @transform_4(%arg0: i32, %arg1: i32) -> (i32, i32, i32) {
    %c0_i32 = arith.constant 0 : i32
    %c0_i32_0 = arith.constant 0 : i32
    %c0_i32_1 = arith.constant 0 : i32
    return %arg1, %c0_i32, %c0_i32_0 : i32, i32, i32
  }
  func.func @transform_5(%arg0: i32, %arg1: i32) -> (i32, i32, i32) {
    %c0_i32 = arith.constant 0 : i32
    %c0_i32_0 = arith.constant 0 : i32
    %c0_i32_1 = arith.constant 0 : i32
    return %arg1, %c0_i32, %c0_i32_0 : i32, i32, i32
  }
  func.func @transform_6(%arg0: i32, %arg1: i32) -> (i32, i32, i32) {
    %c0_i32 = arith.constant 0 : i32
    %c0_i32_0 = arith.constant 0 : i32
    %c0_i32_1 = arith.constant 0 : i32
    return %arg1, %c0_i32, %c0_i32_0 : i32, i32, i32
  }
  func.func @transform_7(%arg0: i32, %arg1: i32) -> (i32, i32, i32) {
    %c0_i32 = arith.constant 0 : i32
    %c0_i32_0 = arith.constant 0 : i32
    %c0_i32_1 = arith.constant 0 : i32
    return %arg1, %c0_i32, %c0_i32_0 : i32, i32, i32
  }
  func.func @transform_8(%arg0: i32, %arg1: i32) -> (i32, i32, i32) {
    %c0_i32 = arith.constant 0 : i32
    %c0_i32_0 = arith.constant 0 : i32
    %c0_i32_1 = arith.constant 0 : i32
    return %arg1, %c0_i32, %c0_i32_0 : i32, i32, i32
  }
  func.func @transform_9(%arg0: i32, %arg1: i32) -> (i32, i32, i32) {
    %c0_i32 = arith.constant 0 : i32
    %c0_i32_0 = arith.constant 0 : i32
    %c0_i32_1 = arith.constant 0 : i32
    return %arg0, %c0_i32, %c0_i32_0 : i32, i32, i32
  }
  func.func @transform_10(%arg0: i32, %arg1: i32) -> (i32, i32, i32) {
    %c0_i32 = arith.constant 0 : i32
    %c0_i32_0 = arith.constant 0 : i32
    %c0_i32_1 = arith.constant 0 : i32
    return %arg0, %c0_i32, %c0_i32_0 : i32, i32, i32
  }
}

</mosaic_0001>

<bundles_post_ra>
// kernel: tpu_custom_call.1
= control target key start
LH: loop header
LB: loop body
LE: loop exit
PB: predicated region body
PF: predicated region fallthrough
CT: control target
= control target key end

     0   :  { %s4022_s13 = smov 0   ;;  %s4024_s14 = smov 0   ;;  %s4679_s0 = inlined_call_operand.vmem [shape: bf16[2,64,48], index: 0, kind: input, shape index: {}]   ;;  %s4680_s1 = inlined_call_operand.vmem [shape: bf16[48,16], index: 1, kind: input, shape index: {}]   ;;  %s4681_s2 = inlined_call_operand.vmem [shape: f32[1,16], index: 2, kind: input, shape index: {}]   ;;  %s4682_s3 = inlined_call_operand.vmem [shape: bf16[2,72,8], index: 3, kind: input, shape index: {}]   ;;  %s4683_s4 = inlined_call_operand.vmem [shape: f32[2,1,8], index: 4, kind: input, shape index: {}]   ;;  %s4684_s5 = inlined_call_operand.vmem [shape: bf16[2,72,16], index: 5, kind: input, shape index: {}]   ;;  %s4685_s6 = inlined_call_operand.vmem [shape: f32[2,1,16], index: 6, kind: input, shape index: {}]   ;;  %s4686_s7 = inlined_call_operand.vmem [shape: f32[2,8,16], index: 7, kind: input, shape index: {}]   ;;  %s4687_s8 = inlined_call_operand.vmem [shape: f32[2,8,16], index: 8, kind: input, shape index: {}]   ;;  %s4688_s9 = inlined_call_operand.vmem [shape: f32[2,64,16], index: 9, kind: output, shape index: {0}]   ;;  %s4689_s10 = inlined_call_operand.vmem [shape: f32[2,1,1], index: 10, kind: output, shape index: {1}]  }
   0x1   :  { %4693 = sst [smem:[#allocation11_spill]] %s4679_s0  ;;  %s4026_s15 = smov 0  }
   0x2   :  { %s4028_s16 = smov 0   ;;  %s4030_s17 = smov 0  }
   0x3 LB: > { %4694 = sst [smem:[#allocation6_spill]] %s3954_s15  ;;  %s30_s18 = sadd.s32 1, %s3954_s15  ;;  %s3962_s17 = sphi %s4030_s17, %s21_s17   ;;  %s3958_s16 = sphi %s4028_s16, %s4706_s16   ;;  %s3954_s15 = sphi %s4026_s15, %s4705_s15   ;;  %s3950_s14 = sphi %s4024_s14, %s4704_s14   ;;  %s3946_s13 = sphi %s4022_s13, %s4703_s13  }
   0x4   : > { %4695 = sst [smem:[#allocation7_spill]] %s3958_s16  ;;  %s33_s19 = sadd.s32 1, %s3958_s16 }
   0x5   : > { %4696 = sst [smem:[#allocation8_spill]] %s3962_s17  ;;  %p31_p0 = scmp.ge.s32.totalorder %s30_s18, 2 }
   0x6   : > { %p3225_p1 = scmp.ge.s32.totalorder %s3962_s17, 1  ;;  %p381_p2 = scmp.lt.s32.totalorder %s3962_s17, 5 }
   0x7   : > { %s4708_s18 = smov (%p31_p0, %s30_s18), 0  ;;  %s4710_s19 = smov (!%p31_p0, %s33_s19), %s3958_s16 }
   0x8   : > { %4697 = sst [smem:[#allocation9_spill]] %s4708_s18  ;;  %p382_p3 = pnand %p3225_p1, %p381_p2 }
   0x9   : > { %p35_p4 = scmp.ge.s32.totalorder %s4710_s19, 2  ;;  %p446_p5 = scmp.lt.s32.totalorder (!%p382_p3), %s3950_s14, 1 }
   0xa   : > { %385 = sbr.rel (%p382_p3) target bundleno = 1837 (0x72d), region = 56  ;;  %p451_p6 = scmp.lt.s32.totalorder (!%p382_p3), %s3946_s13, 1 }
   0xb   : > { %s4712_s19 = smov (%p35_p4, %s4710_s19), 0  ;;  %s4699_s0 = sld [smem:[#allocation11_spill]] (!%p382_p3) }
   0xc   : > { %4698 = sst [smem:[#allocation10_spill]] %s4712_s19  ;;  %p3234_p7 = scmp.ne.s32.totalorder (!%p382_p3), %s3946_s13, 0 }
  0x11   : > { %s4714_s14 = smov (!%p446_p5, %s3950_s14), 1  ;;  %vm488_vm0 = vcmask (!%p3234_p7), 64512   ;;  %vm490_vm1 = vcmask (!%p3234_p7), 58368   ;;  %v3883_v0 = vld [vmem:[%s4680_s1] sm:$0xff] (!%p3234_p7)   ;;  %v3964_v1 = vmov (!%p3234_p7), 0.0   ;;  %v3884_v2 = vld [vmem:[%s4680_s1 + $0x8] sm:$0xff] (!%p3234_p7)  }
  0x12   : > { %s4058_s20 = scalar_select %p451_p6, %s3946_s13, 1 }
  0x13   : > { %s3340_s21 = sshll.u32 %s4714_s14, 5  ;;  %s3341_s22 = sshll.u32 %s4714_s14, 6  ;;  %489 = vst.msk [vmem:[#allocation4] sm:$0xff] (!%p3234_p7), %vm488_vm0, %v3964_v1  ;;  %492 = vst.msk [vmem:[#allocation4 + $0x10] sm:$0xff] (!%p3234_p7), %vm488_vm0, %v3964_v1  ;;  %3457 = vmatprep.subr.bf16.mxu0 (!%p3234_p7), %v3883_v0  ;;  %3679 = vmatprep.subr.bf16.mxu1 (!%p3234_p7), %v3883_v0  ;;  %v3885_v3 = vld [vmem:[%s4680_s1 + $0x10] sm:$0xff] (!%p3234_p7)   ;;  %vm589_vm2 = vcmask (!%p3234_p7), 392192  }
  0x14   : > { %s4065_s25 = scalar_lea.vmem %s4699_s0, %s3340_s21  ;;  %s3839_s26 = smul.u32 36, %s4058_s20  ;;  %491 = vst.msk [vmem:[#allocation4 + $0x8] sm:$0x3] (!%p3234_p7), %vm490_vm1, %v3964_v1  ;;  %493 = vst.msk [vmem:[#allocation4 + $0x18] sm:$0x3] (!%p3234_p7), %vm490_vm1, %v3964_v1  ;;  %3458 = vmatpush3.bf16.msra.mxu0 (!%p3234_p7), %v3883_v0  ;;  %3682 = vmatpush3.bf16.msra.mxu1 (!%p3234_p7), %v3883_v0  ;;  %vm667_vm3 = vcmask (!%p3234_p7), 130048  }
  0x15   : > { %s3230_s21 = sshll.u32 %s4058_s20, 3  ;;  %s4090_s27 = scalar_lea.vmem %s4688_s9, %s3341_s22  ;;  %494 = vst.msk [vmem:[#allocation4 + $0x20] sm:$0xff] (!%p3234_p7), %vm488_vm0, %v3964_v1  ;;  %496 = vst.msk [vmem:[#allocation4 + $0x30] sm:$0xff] (!%p3234_p7), %vm488_vm0, %v3964_v1  ;;  %3459 = vmatprep.subr.bf16.mxu0 (!%p3234_p7), %v3884_v2  ;;  %3680 = vmatprep.subr.bf16.mxu1 (!%p3234_p7), %v3884_v2  ;;  %v3886_v4 = vld [vmem:[%s4065_s25] sm:$0xff] (!%p3234_p7)   ;;  %v3888_v5 = vld [vmem:[%s4065_s25 + $0x10] sm:$0xff] (!%p3234_p7)   ;;  %vm796_vm4 = vcmask (!%p3234_p7), 0  }
  0x16   : > { %s4079_s16 = scalar_lea.vmem %s4682_s3, %s3839_s26  ;;  %s4084_s23 = scalar_lea.vmem %s4684_s5, %s3839_s26  ;;  %495 = vst.msk [vmem:[#allocation4 + $0x28] sm:$0x3] (!%p3234_p7), %vm490_vm1, %v3964_v1  ;;  %497 = vst.msk [vmem:[#allocation4 + $0x38] sm:$0x3] (!%p3234_p7), %vm490_vm1, %v3964_v1  ;;  %3463 = vmatprep.mubr.msk.bf16.mxu0 (!%p3234_p7), %vm589_vm2, %v3886_v4  ;;  %3467 = vmatprep.mubr.msk.bf16.mxu1 (!%p3234_p7), %vm589_vm2, %v3888_v5  ;;  %v3887_v6 = vld [vmem:[%s4065_s25 + $0x8] sm:$0xff] (!%p3234_p7)   ;;  %v3889_v7 = vld [vmem:[%s4065_s25 + $0x18] sm:$0xff] (!%p3234_p7)  }
  0x17   : > { %s4095_s30 = scalar_lea.vmem %s4686_s7, %s3230_s21  ;;  %s4100_s19 = scalar_lea.vmem %s4687_s8, %s3230_s21  ;;  %498 = vst.msk [vmem:[#allocation4 + $0x40] sm:$0xff] (!%p3234_p7), %vm488_vm0, %v3964_v1  ;;  %500 = vst.msk [vmem:[#allocation4 + $0x50] sm:$0xff] (!%p3234_p7), %vm488_vm0, %v3964_v1  ;;  %v3235_v8 = vld [vmem:[%s4681_s2] ss:$0 sm:$0xff] (!%p3234_p7) }
  0x18   : > { %s482_s17 = scalar_lea.vmem %s4689_s10, %s4714_s14  ;;  %487 = sbr.rel (%p3234_p7) target bundleno = 621 (0x26d), region = 60  ;;  %499 = vst.msk [vmem:[#allocation4 + $0x48] sm:$0x3] (!%p3234_p7), %vm490_vm1, %v3964_v1  ;;  %501 = vst.msk [vmem:[#allocation4 + $0x58] sm:$0x3] (!%p3234_p7), %vm490_vm1, %v3964_v1  ;;  %3460 = vmatpush3.bf16.msra.mxu0 (!%p3234_p7), %v3884_v2  ;;  %3683 = vmatpush3.bf16.msra.mxu1 (!%p3234_p7), %v3884_v2 }
  0x19   : > { %502 = vst.msk [vmem:[#allocation4 + $0x60] sm:$0xff] (!%p3234_p7), %vm488_vm0, %v3964_v1  ;;  %504 = vst.msk [vmem:[#allocation4 + $0x70] sm:$0xff] (!%p3234_p7), %vm488_vm0, %v3964_v1  ;;  %3461 = vmatprep.subr.bf16.mxu0 (!%p3234_p7), %v3885_v3  ;;  %3681 = vmatprep.subr.bf16.mxu1 (!%p3234_p7), %v3885_v3 }
  0x1a   : > { %503 = vst.msk [vmem:[#allocation4 + $0x68] sm:$0x3] (!%p3234_p7), %vm490_vm1, %v3964_v1  ;;  %505 = vst.msk [vmem:[#allocation4 + $0x78] sm:$0x3] (!%p3234_p7), %vm490_vm1, %v3964_v1 }
  0x1b   : > { %506 = vst.msk [vmem:[#allocation4 + $0x80] sm:$0xff] (!%p3234_p7), %vm488_vm0, %v3964_v1  ;;  %508 = vst.msk [vmem:[#allocation4 + $0x90] sm:$0xff] (!%p3234_p7), %vm488_vm0, %v3964_v1 }
  0x1c   : > { %507 = vst.msk [vmem:[#allocation4 + $0x88] sm:$0x3] (!%p3234_p7), %vm490_vm1, %v3964_v1  ;;  %509 = vst.msk [vmem:[#allocation4 + $0x98] sm:$0x3] (!%p3234_p7), %vm490_vm1, %v3964_v1  ;;  %3462 = vmatpush3.bf16.msra.mxu0 (!%p3234_p7), %v3885_v3  ;;  %3684 = vmatpush3.bf16.msra.mxu1 (!%p3234_p7), %v3885_v3 }
  0x1d   : > { %510 = vst.msk [vmem:[#allocation5] sm:$0xff] (!%p3234_p7), %vm488_vm0, %v3964_v1  ;;  %512 = vst.msk [vmem:[#allocation5 + $0x10] sm:$0xff] (!%p3234_p7), %vm488_vm0, %v3964_v1 }
  0x1e   : > { %511 = vst.msk [vmem:[#allocation5 + $0x8] sm:$0x3] (!%p3234_p7), %vm490_vm1, %v3964_v1  ;;  %513 = vst.msk [vmem:[#allocation5 + $0x18] sm:$0x3] (!%p3234_p7), %vm490_vm1, %v3964_v1 }
  0x1f   : > { %514 = vst.msk [vmem:[#allocation5 + $0x20] sm:$0xff] %vm488_vm0, %v3964_v1  ;;  %516 = vst.msk [vmem:[#allocation5 + $0x30] sm:$0xff] %vm488_vm0, %v3964_v1  ;;  %3464 = vmatmul.mubr.msk.bf16.vlgmr.msra.gmra.mrb[0].mxu0 %vm589_vm2, %v3887_v6  ;;  %3468 = vmatmul.mubr.msk.bf16.vlgmr.msra.gmra.mrb[0].mxu1 %vm589_vm2, %v3889_v7 }
  0x20   : > { %515 = vst.msk [vmem:[#allocation5 + $0x28] sm:$0x3] %vm490_vm1, %v3964_v1  ;;  %517 = vst.msk [vmem:[#allocation5 + $0x38] sm:$0x3] %vm490_vm1, %v3964_v1 }
  0x21   : > { %518 = vst.msk [vmem:[#allocation5 + $0x40] sm:$0xff] %vm488_vm0, %v3964_v1  ;;  %520 = vst.msk [vmem:[#allocation5 + $0x50] sm:$0xff] %vm488_vm0, %v3964_v1 }
  0x22   : > { %519 = vst.msk [vmem:[#allocation5 + $0x48] sm:$0x3] %vm490_vm1, %v3964_v1  ;;  %521 = vst.msk [vmem:[#allocation5 + $0x58] sm:$0x3] %vm490_vm1, %v3964_v1 }
  0x23   : > { %522 = vst.msk [vmem:[#allocation5 + $0x60] sm:$0xff] %vm488_vm0, %v3964_v1  ;;  %524 = vst.msk [vmem:[#allocation5 + $0x70] sm:$0xff] %vm488_vm0, %v3964_v1 }
  0x24   : > { %523 = vst.msk [vmem:[#allocation5 + $0x68] sm:$0x3] %vm490_vm1, %v3964_v1  ;;  %525 = vst.msk [vmem:[#allocation5 + $0x78] sm:$0x3] %vm490_vm1, %v3964_v1 }
  0x25   : > { %526 = vst.msk [vmem:[#allocation5 + $0x80] sm:$0xff] %vm488_vm0, %v3964_v1  ;;  %528 = vst.msk [vmem:[#allocation5 + $0x90] sm:$0xff] %vm488_vm0, %v3964_v1 }
  0x26   : > { %527 = vst.msk [vmem:[#allocation5 + $0x88] sm:$0x3] %vm490_vm1, %v3964_v1  ;;  %529 = vst.msk [vmem:[#allocation5 + $0x98] sm:$0x3] %vm490_vm1, %v3964_v1 }
  0x27   : > { %797 = vst.msk [vmem:[#allocation3] sm:$0x1] %vm796_vm4, %v3964_v1 }
  0xf2   : > { %v3465_v9 = vpop.f32.mrb[0].mxu0  ;;  %v3469_v10 = vpop.f32.mrb[0].mxu1 }
  0xf3   : > { %v4207_v11 = vadd.f32 %v3465_v9, %v3235_v8  ;;  %v636_v12 = vpop.f32.mrb[1].mxu0  ;;  %v652_v13 = vpop.f32.mrb[1].mxu1  ;;  %v661_v30 = vadd.f32 %v3469_v10, %v3235_v8 }
  0xf4   : > { %v637_v14 = vadd.f32 %v3235_v8, %v636_v12  ;;  %v3466_v15 = vpop.f32.mrb[2].mxu0  ;;  %v3470_v16 = vpop.f32.mrb[2].mxu1  ;;  %v653_v24 = vadd.f32 %v3235_v8, %v652_v13 }
  0xf5   : > { %v648_v17 = vadd.f32 %v3466_v15, %v3235_v8  ;;  %v639_v18 = vpop.f32.mrb[3].mxu0  ;;  %v674_v19 = vsel %vm667_vm3, %v4207_v11, 0.0  ;;  %v655_v20 = vpop.f32.mrb[3].mxu1  ;;  %v664_v29 = vadd.f32 %v3470_v16, %v3235_v8  ;;  %v686_v32 = vsel %vm667_vm3, %v661_v30, 0.0 }
  0xf6   : > { %v640_v21 = vadd.f32 %v3235_v8, %v639_v18  ;;  %675 = vadd.xlane.f32.xlu1 %v674_v19  ;;  %v668_v22 = vsel %vm667_vm3, %v637_v14, 0.0  ;;  %v656_v23 = vadd.f32 %v3235_v8, %v655_v20  ;;  %v680_v28 = vsel %vm667_vm3, %v653_v24, 0.0 }
  0xf7   : > { %669 = vadd.xlane.f32.xlu0 %v668_v22  ;;  %v677_v25 = vsel %vm667_vm3, %v648_v17, 0.0  ;;  %v689_v31 = vsel %vm667_vm3, %v664_v29, 0.0 }
  0xf8   : > { %v671_v26 = vsel %vm667_vm3, %v640_v21, 0.0  ;;  %v683_v27 = vsel %vm667_vm3, %v656_v23, 0.0 }
  0xfa   : > { %678 = vadd.xlane.f32.xlu1 %v677_v25 }
  0xfb   : > { %672 = vadd.xlane.f32.xlu0 %v671_v26 }
  0xfe   : > { %684 = vadd.xlane.f32.xlu1 %v683_v27 }
  0xff   : > { %681 = vadd.xlane.f32.xlu0 %v680_v28 }
 0x102   : > { %690 = vadd.xlane.f32.xlu1 %v689_v31 }
 0x103   : > { %687 = vadd.xlane.f32.xlu0 %v686_v32 }
 0x183   : > { %v676_v33 = vpop.xlane.xlu1 %675 }
 0x184   : > { %v670_v34 = vpop.xlane.xlu0 %669  ;;  %v695_v39 = vmul.f32 0.0625, %v676_v33 }
 0x185   : > { %v693_v37 = vmul.f32 0.0625, %v670_v34 }
 0x187   : > { %v679_v35 = vpop.xlane.xlu1 %678 }
 0x188   : > { %v673_v36 = vpop.xlane.xlu0 %672  ;;  %v696_v43 = vmul.f32 0.0625, %v679_v35 }
 0x189   : > { %v694_v38 = vmul.f32 0.0625, %v673_v36 }
 0x18b   : > { %v701_v40 = vadd.f32 %v694_v38, %v693_v37  ;;  %v685_v41 = vpop.xlane.xlu1 %684 }
 0x18c   : > { %v682_v42 = vpop.xlane.xlu0 %681  ;;  %v698_v48 = vmul.f32 0.0625, %v685_v41 }
 0x18d   : > { %v702_v44 = vadd.f32 %v701_v40, %v695_v39  ;;  %v697_v45 = vmul.f32 0.0625, %v682_v42 }
 0x18f   : > { %v703_v46 = vadd.f32 %v702_v44, %v696_v43  ;;  %v691_v50 = vpop.xlane.xlu1 %690 }
 0x190   : > { %v688_v47 = vpop.xlane.xlu0 %687  ;;  %v700_v53 = vmul.f32 0.0625, %v691_v50 }
 0x191   : > { %v704_v49 = vadd.f32 %v703_v46, %v697_v45  ;;  %v699_v52 = vmul.f32 0.0625, %v688_v47 }
 0x193   : > { %v705_v51 = vadd.f32 %v704_v49, %v698_v48 }
 0x195   : > { %v706_v54 = vadd.f32 %v705_v51, %v699_v52 }
 0x197   : > { %v707_v55 = vadd.f32 %v706_v54, %v700_v53 }
 0x199   : > { %v708_v56 = vrot.slane %v707_v55, 4 }
 0x19b   : > { %v709_v57 = vadd.f32 %v708_v56, %v707_v55 }
 0x19d   : > { %v710_v58 = vrot.slane %v709_v57, 2 }
 0x19f   : > { %v711_v59 = vadd.f32 %v710_v58, %v709_v57 }
 0x1a1   : > { %v712_v60 = vrot.slane %v711_v59, 1 }
 0x1a3   : > { %v713_v61 = vadd.f32 %v712_v60, %v711_v59 }
 0x1a5   : > { %v715_v62 = vmul.f32 0.015625, %v713_v61 }
 0x1a7   : > { %v4218_v63 = vsub.f32 %v640_v21, %v715_v62  ;;  %v4220_v0 = vsub.f32 %v637_v14, %v715_v62  ;;  %v4222_v2 = vsub.f32 %v648_v17, %v715_v62  ;;  %v4225_v3 = vsub.f32 %v4207_v11, %v715_v62 }
 0x1a8   : > { %v4231_v6 = vsub.f32 %v656_v23, %v715_v62  ;;  %v4233_v7 = vsub.f32 %v653_v24, %v715_v62  ;;  %v723_v12 = vsub.f32 %v664_v29, %v715_v62  ;;  %v722_v13 = vsub.f32 %v661_v30, %v715_v62 }
 0x1a9   : > { %v725_v4 = vmul.f32 %v4218_v63, %v4218_v63  ;;  %v724_v5 = vmul.f32 %v4220_v0, %v4220_v0  ;;  %v727_v10 = vmul.f32 %v4222_v2, %v4222_v2  ;;  %v726_v11 = vmul.f32 %v4225_v3, %v4225_v3 }
 0x1aa   : > { %v729_v16 = vmul.f32 %v4231_v6, %v4231_v6  ;;  %v728_v17 = vmul.f32 %v4233_v7, %v4233_v7  ;;  %v731_v20 = vmul.f32 %v723_v12, %v723_v12  ;;  %v730_v21 = vmul.f32 %v722_v13, %v722_v13 }
 0x1ab   : > { %v735_v8 = vsel %vm667_vm3, %v725_v4, 0.0  ;;  %v732_v9 = vsel %vm667_vm3, %v724_v5, 0.0  ;;  %v741_v14 = vsel %vm667_vm3, %v727_v10, 0.0  ;;  %v738_v15 = vsel %vm667_vm3, %v726_v11, 0.0 }
 0x1ac   : > { %736 = vadd.xlane.f32.xlu1 %v735_v8  ;;  %733 = vadd.xlane.f32.xlu0 %v732_v9  ;;  %v747_v18 = vsel %vm667_vm3, %v729_v16, 0.0  ;;  %v744_v19 = vsel %vm667_vm3, %v728_v17, 0.0  ;;  %v753_v22 = vsel %vm667_vm3, %v731_v20, 0.0  ;;  %v750_v23 = vsel %vm667_vm3, %v730_v21, 0.0 }
 0x1b0   : > { %742 = vadd.xlane.f32.xlu1 %v741_v14  ;;  %739 = vadd.xlane.f32.xlu0 %v738_v15 }
 0x1b4   : > { %748 = vadd.xlane.f32.xlu1 %v747_v18  ;;  %745 = vadd.xlane.f32.xlu0 %v744_v19 }
 0x1b8   : > { %754 = vadd.xlane.f32.xlu1 %v753_v22  ;;  %751 = vadd.xlane.f32.xlu0 %v750_v23 }
 0x239   : > { %v737_v24 = vpop.xlane.xlu1 %736  ;;  %v734_v25 = vpop.xlane.xlu0 %733 }
 0x23a   : > { %v757_v26 = vmul.f32 0.0625, %v737_v24  ;;  %v756_v27 = vmul.f32 0.0625, %v734_v25 }
 0x23c   : > { %v764_v30 = vadd.f32 %v757_v26, %v756_v27 }
 0x23d   : > { %v743_v28 = vpop.xlane.xlu1 %742  ;;  %v740_v29 = vpop.xlane.xlu0 %739 }
 0x23e   : > { %v758_v31 = vmul.f32 0.0625, %v740_v29  ;;  %v759_v32 = vmul.f32 0.0625, %v743_v28 }
 0x240   : > { %v765_v33 = vadd.f32 %v764_v30, %v758_v31 }
 0x241   : > { %v749_v34 = vpop.xlane.xlu1 %748  ;;  %v746_v35 = vpop.xlane.xlu0 %745 }
 0x242   : > { %v766_v36 = vadd.f32 %v765_v33, %v759_v32  ;;  %v760_v37 = vmul.f32 0.0625, %v746_v35  ;;  %v761_v38 = vmul.f32 0.0625, %v749_v34 }
 0x244   : > { %v767_v39 = vadd.f32 %v766_v36, %v760_v37 }
 0x245   : > { %v755_v40 = vpop.xlane.xlu1 %754  ;;  %v752_v41 = vpop.xlane.xlu0 %751 }
 0x246   : > { %v768_v42 = vadd.f32 %v767_v39, %v761_v38  ;;  %v762_v1 = vmul.f32 0.0625, %v752_v41  ;;  %v763_v43 = vmul.f32 0.0625, %v755_v40 }
 0x248   : > { %v769_v44 = vadd.f32 %v768_v42, %v762_v1 }
 0x24a   : > { %v770_v45 = vadd.f32 %v769_v44, %v763_v43 }
 0x24c   : > { %v771_v46 = vrot.slane %v770_v45, 4 }
 0x24e   : > { %v772_v47 = vadd.f32 %v771_v46, %v770_v45 }
 0x250   : > { %v773_v48 = vrot.slane %v772_v47, 2 }
 0x252   : > { %v774_v49 = vadd.f32 %v773_v48, %v772_v47 }
 0x254   : > { %v775_v50 = vrot.slane %v774_v49, 1 }
 0x256   : > { %v776_v51 = vadd.f32 %v775_v50, %v774_v49 }
 0x258   : > { %v777_v52 = vmul.f32 0.015625, %v776_v51 }
 0x25a   : > { %v778_v53 = vadd.f32 1e-05, %v777_v52 }
 0x25c   : > { %3890 = vrsqrt.f32 %v778_v53 }
 0x266   : > { %v3891_v54 = vpop.eup %3890 }
 0x267   : > { %v780_v55 = vmul.f32 %v3891_v54, %v4220_v0  ;;  %v781_v56 = vmul.f32 %v3891_v54, %v4218_v63  ;;  %v782_v57 = vmul.f32 %v3891_v54, %v4225_v3  ;;  %v783_v58 = vmul.f32 %v3891_v54, %v4222_v2 }
 0x268   : > { %v784_v59 = vmul.f32 %v3891_v54, %v4233_v7  ;;  %v785_v60 = vmul.f32 %v3891_v54, %v4231_v6  ;;  %v786_v61 = vmul.f32 %v3891_v54, %v722_v13  ;;  %v787_v62 = vmul.f32 %v3891_v54, %v723_v12 }
 0x269   : > { %788 = vst.msk [vmem:[#allocation2] sm:$0xff] %vm667_vm3, %v780_v55  ;;  %789 = vst.msk [vmem:[#allocation2 + $0x8] sm:$0xff] %vm667_vm3, %v781_v56 }
 0x26a   : > { %790 = vst.msk [vmem:[#allocation2 + $0x10] sm:$0xff] %vm667_vm3, %v782_v57  ;;  %791 = vst.msk [vmem:[#allocation2 + $0x18] sm:$0xff] %vm667_vm3, %v783_v58 }
 0x26b   : > { %792 = vst.msk [vmem:[#allocation2 + $0x20] sm:$0xff] %vm667_vm3, %v784_v59  ;;  %793 = vst.msk [vmem:[#allocation2 + $0x28] sm:$0xff] %vm667_vm3, %v785_v60 }
 0x26c   : > { %794 = vst.msk [vmem:[#allocation2 + $0x30] sm:$0xff] %vm667_vm3, %v786_v61  ;;  %795 = vst.msk [vmem:[#allocation2 + $0x38] sm:$0xff] %vm667_vm3, %v787_v62 }
 0x26d PF: > { %v806_v63 = vld [vmem:[%s4079_s16] sm:$0xf]  ;;  %vm862_vm5 = vcmask 1043456   ;;  %vm817_vm6 = vcmask 64512   ;;  %v808_v3 = vld [vmem:[%s4079_s16 + $0x8] sm:$0xf]  ;;  %s4700_s11 = scalar_lea.vmem %s4683_s4, %s4058_s20  ;;  %s4701_s15 = scalar_lea.vmem %s4685_s6, %s4058_s20 }
 0x26e   : > { %3822 = vmatprep.subr.msk.bf16.mxu0 %vm862_vm5, %v806_v63  ;;  %v944_v2 = vsel %vm862_vm5, %v806_v63, 0  ;;  %v826_v11 = vld [vmem:[#allocation4] sm:$0xff]  ;;  %v1036_v22 = vsel %vm862_vm5, %v808_v3, 0  ;;  %v809_v26 = vld [vmem:[%s4079_s16 + $0xc] sm:$0xf]  ;;  %s3965_s20 = smov 8  }
 0x26f   : > { %3482 = vmatpush3.bf16.msra.mxu0 %v944_v2  ;;  %v807_v12 = vld [vmem:[%s4079_s16 + $0x4] sm:$0xf]  ;;  %v1136_v47 = vsel %vm862_vm5, %v809_v26, 0  ;;  %v810_v48 = vld [vmem:[%s4079_s16 + $0x10] sm:$0xf]  ;;  %s3966_s0 = smov 120  }
 0x270   : > { %v4267_v0 = vld [vmem:[#allocation2] sm:$0xff]  ;;  %v4274_v4 = vld [vmem:[#allocation2 + $0x8] sm:$0xff]  ;;  %3823 = vmatprep.subr.msk.bf16.mxu0 %vm862_vm5, %v808_v3  ;;  %3821 = vmatprep.subr.msk.bf16.mxu1 %vm862_vm5, %v807_v12  ;;  %v864_v15 = vsel %vm862_vm5, %v807_v12, 0  ;;  %v1228_v55 = vsel %vm862_vm5, %v810_v48, 0  ;;  %v811_v56 = vld [vmem:[%s4079_s16 + $0x14] sm:$0xf] }
 0x271   : > { %818 = vst.msk [vmem:[#allocation4 + $0x11] sm:$0xff] %vm817_vm6, %v4267_v0  ;;  %v4276_v5 = vld [vmem:[#allocation2 + $0x10] sm:$0xff]  ;;  %819 = vst.msk [vmem:[#allocation4 + $0x21] sm:$0xff] %vm817_vm6, %v4274_v4  ;;  %v4282_v6 = vld [vmem:[#allocation2 + $0x18] sm:$0xff]  ;;  %3472 = vmatpush3.bf16.msra.mxu1 %v864_v15  ;;  %v1211_v59 = vpack.c.bf16 %v4274_v4, %v4267_v0  ;;  %v1328_v62 = vsel %vm862_vm5, %v811_v56, 0  ;;  %vm2755_vm7 = vcmask 0  }
 0x272   : > { %820 = vst.msk [vmem:[#allocation4 + $0x31] sm:$0xff] %vm817_vm6, %v4276_v5  ;;  %v4284_v7 = vld [vmem:[#allocation2 + $0x20] sm:$0xff]  ;;  %v4286_v8 = vld [vmem:[#allocation2 + $0x28] sm:$0xff]  ;;  %821 = vst.msk [vmem:[#allocation4 + $0x41] sm:$0xff] %vm817_vm6, %v4282_v6  ;;  %v1212_v60 = vpack.c.bf16 %v4282_v6, %v4276_v5  ;;  %vm3033_vm8 = vcmask 130048   ;;  %p3337_p8 = scmp.ne.s32.totalorder %s3946_s13, 1 }
 0x273   : > { %822 = vst.msk [vmem:[#allocation4 + $0x51] sm:$0xff] %vm817_vm6, %v4284_v7  ;;  %v4293_v9 = vld [vmem:[#allocation2 + $0x30] sm:$0xff]  ;;  %823 = vst.msk [vmem:[#allocation4 + $0x61] sm:$0xff] %vm817_vm6, %v4286_v8  ;;  %v4299_v10 = vld [vmem:[#allocation2 + $0x38] sm:$0xff]  ;;  %v1213_v61 = vpack.c.bf16 %v4286_v8, %v4284_v7 }
 0x274   : > { %824 = vst.msk [vmem:[#allocation4 + $0x71] sm:$0xff] %vm817_vm6, %v4293_v9  ;;  %825 = vst.msk [vmem:[#allocation4 + $0x81] sm:$0xff] %vm817_vm6, %v4299_v10  ;;  %v838_v13 = vld [vmem:[#allocation4 + $0x1] sm:$0xff]  ;;  %v812_v63 = vld [vmem:[%s4079_s16 + $0x18] sm:$0xf]  ;;  %v1214_v2 = vpack.c.bf16 %v4299_v10, %v4293_v9 }
 0x275   : > { %v1011_v27 = vld [vmem:[#allocation4 + $0x2] sm:$0xff] }
 0x278   : > { %v827_v14 = vld [vmem:[#allocation4 + $0x10] sm:$0xff]  ;;  %v828_v18 = vld [vmem:[#allocation4 + $0x20] sm:$0xff] }
 0x279   : > { %v839_v16 = vld [vmem:[#allocation4 + $0x11] sm:$0xff]  ;;  %v834_v17 = vpack.c.bf16 %v827_v14, %v826_v11  ;;  %v830_v23 = vld [vmem:[#allocation4 + $0x40] sm:$0xff]  ;;  %v1119_v52 = vpack.c.bf16 %v828_v18, %v827_v14  ;;  %v813_v14 = vld [vmem:[%s4079_s16 + $0x1c] sm:$0xf] }
 0x27a   : > { %v829_v19 = vld [vmem:[#allocation4 + $0x30] sm:$0xff]  ;;  %v846_v20 = vpack.c.bf16 %v839_v16, %v838_v13  ;;  %v832_v29 = vld [vmem:[#allocation4 + $0x60] sm:$0xff]  ;;  %v1429_v13 = vsel %vm862_vm5, %v812_v63, 0 }
 0x27b   : > { %v4306_v21 = vpack.c.bf16 %v829_v19, %v828_v18  ;;  %v831_v24 = vld [vmem:[#allocation4 + $0x50] sm:$0xff]  ;;  %3483 = vmatprep.mubr.msk.bf16.mxu0 %vm817_vm6, %v834_v17  ;;  %v1504_v31 = vld [vmem:[#allocation4 + $0x21] sm:$0xff]  ;;  %v1120_v53 = vpack.c.bf16 %v830_v23, %v829_v19  ;;  %v1529_v17 = vsel %vm862_vm5, %v813_v14, 0 }
 0x27c   : > { %v4310_v25 = vpack.c.bf16 %v831_v24, %v830_v23  ;;  %3473 = vmatprep.mubr.msk.bf16.mxu1 %vm817_vm6, %v846_v20  ;;  %v4316_v28 = vld [vmem:[#allocation4 + $0x12] sm:$0xff]  ;;  %v1506_v33 = vld [vmem:[#allocation4 + $0x41] sm:$0xff]  ;;  %v1121_v54 = vpack.c.bf16 %v832_v29, %v831_v24 }
 0x27d   : > { %3484 = vmatmul.mubr.msk.bf16.vlgmr.msra.gmra.mrb[0].mxu0 %vm817_vm6, %v4306_v21  ;;  %v833_v30 = vld [vmem:[#allocation4 + $0x70] sm:$0xff]  ;;  %v1019_v38 = vpack.c.bf16 %v4316_v28, %v1011_v27  ;;  %v1508_v39 = vld [vmem:[#allocation4 + $0x61] sm:$0xff] }
 0x27e   : > { %3492 = vmatpush3.bf16.msra.mxu0 %v1036_v22  ;;  %3487 = vmatprep.mubr.msk.bf16.mxu0 %vm817_vm6, %v4310_v25  ;;  %v1505_v32 = vld [vmem:[#allocation4 + $0x31] sm:$0xff]  ;;  %v4323_v36 = vpack.c.bf16 %v833_v30, %v832_v29  ;;  %v1013_v41 = vld [vmem:[#allocation4 + $0x22] sm:$0xff] }
 0x27f   : > { %3824 = vmatprep.subr.msk.bf16.mxu0 %vm862_vm5, %v809_v26  ;;  %v1507_v34 = vld [vmem:[#allocation4 + $0x51] sm:$0xff]  ;;  %v4321_v35 = vpack.c.bf16 %v1505_v32, %v1504_v31  ;;  %v1015_v1 = vld [vmem:[#allocation4 + $0x42] sm:$0xff]  ;;  %v1311_v3 = vpack.c.bf16 %v1013_v41, %v4316_v28 }
 0x280   : > { %v4325_v37 = vpack.c.bf16 %v1507_v34, %v1506_v33  ;;  %v1509_v40 = vld [vmem:[#allocation4 + $0x71] sm:$0xff]  ;;  %v1017_v49 = vld [vmem:[#allocation4 + $0x62] sm:$0xff] }
 0x281   : > { %3474 = vmatmul.mubr.msk.bf16.vlgmr.msra.gmra.mrb[0].mxu1 %vm817_vm6, %v4321_v35  ;;  %v1014_v42 = vld [vmem:[#allocation4 + $0x32] sm:$0xff]  ;;  %v4335_v44 = vpack.c.bf16 %v1509_v40, %v1508_v39  ;;  %v1118_v57 = vld [vmem:[#allocation4 + $0x80] sm:$0xff] }
 0x282   : > { %3477 = vmatprep.mubr.msk.bf16.mxu1 %vm817_vm6, %v4325_v37  ;;  %v1016_v43 = vld [vmem:[#allocation4 + $0x52] sm:$0xff]  ;;  %v4337_v45 = vpack.c.bf16 %v1014_v42, %v1013_v41  ;;  %v1122_v58 = vpack.c.bf16 %v1118_v57, %v833_v30  ;;  %v1312_v11 = vpack.c.bf16 %v1015_v1, %v1014_v42  ;;  %v1310_v15 = vld [vmem:[#allocation4 + $0x82] sm:$0xff] }
 0x283   : > { %v4339_v46 = vpack.c.bf16 %v1016_v43, %v1015_v1  ;;  %v1018_v50 = vld [vmem:[#allocation4 + $0x72] sm:$0xff]  ;;  %v1313_v12 = vpack.c.bf16 %v1017_v49, %v1016_v43  ;;  %v814_v18 = vld [vmem:[%s4079_s16 + $0x20] sm:$0xf]  ;;  %v1727_v27 = vld [vmem:[%s4084_s23 + $0x4] sm:$0xf] }
 0x284   : > { %v1022_v51 = vpack.c.bf16 %v1018_v50, %v1017_v49  ;;  %v1314_v16 = vpack.c.bf16 %v1310_v15, %v1018_v50  ;;  %v1411_v19 = vld [vmem:[#allocation4 + $0x90] sm:$0xff]  ;;  %v1510_v22 = vld [vmem:[#allocation4 + $0x81] sm:$0xff]  ;;  %3830 = vmatprep.subr.msk.bf16.mxu1 %vm862_vm5, %v1727_v27  ;;  %v1782_v28 = vsel %vm862_vm5, %v1727_v27, 0 }
 0x285   : > { %3488 = vmatmul.mubr.msk.bf16.gmra.mrb[4].mxu0 %vm817_vm6, %v4323_v36  ;;  %v1415_v20 = vpack.c.bf16 %v1411_v19, %v1118_v57  ;;  %v1511_v23 = vld [vmem:[#allocation4 + $0x91] sm:$0xff]  ;;  %3562 = vmatpush3.bf16.msra.mxu1 %v1782_v28  ;;  %v1726_v29 = vld [vmem:[%s4084_s23] sm:$0xf] }
 0x286   : > { %3493 = vmatprep.mubr.msk.bf16.mxu0 %vm817_vm6, %v1019_v38  ;;  %v1515_v24 = vpack.c.bf16 %v1511_v23, %v1510_v22  ;;  %3831 = vmatprep.subr.msk.bf16.mxu1 %vm862_vm5, %v1726_v29  ;;  %v3283_v38 = vld [vmem:[%s4700_s11] ss:$0 sm:$0xff] }
 0x289   : > { %3478 = vmatmul.mubr.msk.bf16.gmra.mrb[4].mxu1 %vm817_vm6, %v4335_v44 }
 0x28d   : > { %3494 = vmatmul.mubr.msk.bf16.vlgmr.msra.gmra.mrb[0].mxu0 %vm817_vm6, %v4337_v45 }
 0x28e   : > { %3502 = vmatpush3.bf16.msra.mxu0 %v1136_v47  ;;  %3497 = vmatprep.mubr.msk.bf16.mxu0 %vm817_vm6, %v4339_v46 }
 0x28f   : > { %3825 = vmatprep.subr.msk.bf16.mxu0 %vm862_vm5, %v810_v48 }
 0x295   : > { %3498 = vmatmul.mubr.msk.bf16.gmra.mrb[4].mxu0 %vm817_vm6, %v1022_v51 }
 0x296   : > { %3503 = vmatprep.mubr.msk.bf16.mxu0 %vm817_vm6, %v1119_v52 }
 0x29d   : > { %3504 = vmatmul.mubr.msk.bf16.vlgmr.msra.gmra.mrb[0].mxu0 %vm817_vm6, %v1120_v53 }
 0x29e   : > { %3512 = vmatpush3.bf16.msra.mxu0 %v1228_v55  ;;  %3507 = vmatprep.mubr.msk.bf16.mxu0 %vm817_vm6, %v1121_v54 }
 0x29f   : > { %3826 = vmatprep.subr.msk.bf16.mxu0 %vm862_vm5, %v811_v56 }
 0x2a5   : > { %3508 = vmatmul.mubr.msk.bf16.gmra.mrb[4].mxu0 %vm817_vm6, %v1122_v58 }
 0x2a6   : > { %3513 = vmatprep.mubr.msk.bf16.mxu0 %vm817_vm6, %v1211_v59 }
 0x2ad   : > { %3514 = vmatmul.mubr.msk.bf16.vlgmr.msra.gmra.mrb[0].mxu0 %vm817_vm6, %v1212_v60 }
 0x2ae   : > { %3522 = vmatpush3.bf16.msra.mxu0 %v1328_v62  ;;  %3517 = vmatprep.mubr.msk.bf16.mxu0 %vm817_vm6, %v1213_v61 }
 0x2af   : > { %3827 = vmatprep.subr.msk.bf16.mxu0 %vm862_vm5, %v812_v63 }
 0x2b5   : > { %3518 = vmatmul.mubr.msk.bf16.gmra.mrb[4].mxu0 %vm817_vm6, %v1214_v2 }
 0x2b6   : > { %3523 = vmatprep.mubr.msk.bf16.mxu0 %vm817_vm6, %v1311_v3 }
 0x2bd   : > { %3524 = vmatmul.mubr.msk.bf16.vlgmr.msra.gmra.mrb[0].mxu0 %vm817_vm6, %v1312_v11 }
 0x2be   : > { %3532 = vmatpush3.bf16.msra.mxu0 %v1429_v13  ;;  %3527 = vmatprep.mubr.msk.bf16.mxu0 %vm817_vm6, %v1313_v12  ;;  %v1757_v13 = vld [vmem:[#allocation5 + $0x1] sm:$0xff] }
 0x2bf   : > { %3828 = vmatprep.subr.msk.bf16.mxu0 %vm862_vm5, %v813_v14 }
 0x2c5   : > { %3528 = vmatmul.mubr.msk.bf16.gmra.mrb[4].mxu0 %vm817_vm6, %v1314_v16 }
 0x2c6   : > { %3533 = vmatprep.mubr.msk.bf16.mxu0 %vm817_vm6, %v4306_v21  ;;  %v1629_v21 = vsel %vm862_vm5, %v814_v18, 0 }
 0x2cd   : > { %3534 = vmatmul.mubr.msk.bf16.vlgmr.msra.gmra.mrb[0].mxu0 %vm817_vm6, %v4310_v25  ;;  %v1611_v25 = vld [vmem:[#allocation4 + $0x92] sm:$0xff] }
 0x2ce   : > { %3542 = vmatpush3.bf16.msra.mxu0 %v1529_v17  ;;  %3537 = vmatprep.mubr.msk.bf16.mxu0 %vm817_vm6, %v4323_v36  ;;  %v1615_v26 = vpack.c.bf16 %v1611_v25, %v1310_v15  ;;  %v1862_v25 = vsel %vm862_vm5, %v1726_v29, 0 }
 0x2cf   : > { %3829 = vmatprep.subr.msk.bf16.mxu0 %vm862_vm5, %v814_v18 }
 0x2d5   : > { %3538 = vmatmul.mubr.msk.bf16.gmra.mrb[4].mxu0 %vm817_vm6, %v1415_v20 }
 0x2d6   : > { %3543 = vmatprep.mubr.msk.bf16.mxu0 %vm817_vm6, %v4321_v35 }
 0x2dd   : > { %3544 = vmatmul.mubr.msk.bf16.vlgmr.msra.gmra.mrb[0].mxu0 %vm817_vm6, %v4325_v37 }
 0x2de   : > { %3552 = vmatpush3.bf16.msra.mxu0 %v1629_v21  ;;  %3547 = vmatprep.mubr.msk.bf16.mxu0 %vm817_vm6, %v4335_v44 }
 0x2e5   : > { %3548 = vmatmul.mubr.msk.bf16.gmra.mrb[4].mxu0 %vm817_vm6, %v1515_v24 }
 0x2e6   : > { %3553 = vmatprep.mubr.msk.bf16.mxu0 %vm817_vm6, %v4337_v45 }
 0x2ed   : > { %3554 = vmatmul.mubr.msk.bf16.vlgmr.msra.gmra.mrb[0].mxu0 %vm817_vm6, %v4339_v46 }
 0x2ee   : > { %3557 = vmatprep.mubr.msk.bf16.mxu0 %vm817_vm6, %v1022_v51 }
 0x2f5   : > { %3558 = vmatmul.mubr.msk.bf16.gmra.mrb[4].mxu0 %vm817_vm6, %v1615_v26  ;;  %v1728_v26 = vld [vmem:[%s4084_s23 + $0x8] sm:$0xf] }
 0x354   : > { %v3475_v30 = vpop.f32.mrb[0].mxu1 }
 0x355   : > { %v900_v31 = vpop.f32.mrb[1].mxu1 }
 0x356   : > { %v3476_v32 = vpop.f32.mrb[2].mxu1 }
 0x357   : > { %v903_v33 = vpop.f32.mrb[3].mxu1 }
 0x35c   : > { %v3479_v34 = vpop.f32.mrb[4].mxu1 }
 0x35d   : > { %v916_v35 = vpop.f32.mrb[5].mxu1 }
 0x35e   : > { %v3480_v36 = vpop.f32.mrb[6].mxu1 }
 0x35f   : > { %v919_v37 = vpop.f32.mrb[7].mxu1 }
 0x3c0   : > { %v3555_v39 = vpop.f32.mrb[0].mxu0 }
 0x3c1   : > { %v3685_v40 = vadd.f32 %v3555_v39, %v3475_v30  ;;  %v1665_v41 = vpop.f32.mrb[1].mxu0 }
 0x3c2   : > { %v3686_v42 = vadd.f32 %v1665_v41, %v900_v31  ;;  %v3556_v1 = vpop.f32.mrb[2].mxu0  ;;  %v1745_v31 = vld [vmem:[#allocation5] sm:$0xff] }
 0x3c3   : > { %v1712_v43 = vadd.f32 %v3685_v40, %v3283_v38  ;;  %v3687_v44 = vadd.f32 %v3556_v1, %v3476_v32  ;;  %v1668_v45 = vpop.f32.mrb[3].mxu0  ;;  %v1954_v40 = vsel %vm862_vm5, %v1728_v26, 0  ;;  %v1729_v1 = vld [vmem:[%s4084_s23 + $0xc] sm:$0xf] }
 0x3c4   : > { %v1710_v46 = vadd.f32 %v3686_v42, %v3283_v38  ;;  %v3688_v47 = vadd.f32 %v1668_v45, %v903_v33 }
 0x3c5   : > { %v1720_v48 = vmax.f32 %v1712_v43, 0.0  ;;  %v1713_v49 = vadd.f32 %v3687_v44, %v3283_v38  ;;  %v1929_v44 = vld [vmem:[#allocation5 + $0x2] sm:$0xff] }
 0x3c6   : > { %v1718_v50 = vmax.f32 %v1710_v46, 0.0  ;;  %v1711_v51 = vadd.f32 %v3688_v47, %v3283_v38 }
 0x3c7   : > { %1739 = vst.msk [vmem:[#allocation5 + $0x31] sm:$0xff] %vm817_vm6, %v1720_v48  ;;  %v1721_v52 = vmax.f32 %v1713_v49, 0.0 }
 0x3c8   : > { %1737 = vst.msk [vmem:[#allocation5 + $0x11] sm:$0xff] %vm817_vm6, %v1718_v50  ;;  %v1719_v53 = vmax.f32 %v1711_v51, 0.0  ;;  %v3559_v54 = vpop.f32.mrb[4].mxu0 }
 0x3c9   : > { %1740 = vst.msk [vmem:[#allocation5 + $0x41] sm:$0xff] %vm817_vm6, %v1721_v52  ;;  %v4418_v55 = vpack.c.bf16 %v1721_v52, %v1720_v48  ;;  %v3689_v56 = vadd.f32 %v3559_v54, %v3479_v34  ;;  %v1681_v57 = vpop.f32.mrb[5].mxu0 }
 0x3ca   : > { %1738 = vst.msk [vmem:[#allocation5 + $0x21] sm:$0xff] %vm817_vm6, %v1719_v53  ;;  %v4421_v58 = vpack.c.bf16 %v1719_v53, %v1718_v50  ;;  %v3690_v59 = vadd.f32 %v1681_v57, %v916_v35  ;;  %v3560_v60 = vpop.f32.mrb[6].mxu0  ;;  %v2054_v53 = vsel %vm862_vm5, %v1729_v1, 0  ;;  %v1730_v57 = vld [vmem:[%s4084_s23 + $0x10] sm:$0xf] }
 0x3cb   : > { %v1716_v61 = vadd.f32 %v3689_v56, %v3283_v38  ;;  %v3691_v62 = vadd.f32 %v3560_v60, %v3480_v36  ;;  %v1684_v63 = vpop.f32.mrb[7].mxu0 }
 0x3cc   : > { %v1714_v2 = vadd.f32 %v3690_v59, %v3283_v38  ;;  %v3692_v3 = vadd.f32 %v1684_v63, %v919_v37 }
 0x3cd   : > { %v1724_v11 = vmax.f32 %v1716_v61, 0.0  ;;  %v1717_v12 = vadd.f32 %v3691_v62, %v3283_v38 }
 0x3ce   : > { %v1722_v14 = vmax.f32 %v1714_v2, 0.0  ;;  %v1715_v15 = vadd.f32 %v3692_v3, %v3283_v38  ;;  %v1760_v22 = vld [vmem:[#allocation5 + $0x31] sm:$0xff]  ;;  %v2146_v2 = vsel %vm862_vm5, %v1730_v57, 0 }
 0x3cf   : > { %1743 = vst.msk [vmem:[#allocation5 + $0x71] sm:$0xff] %vm817_vm6, %v1724_v11  ;;  %v1725_v16 = vmax.f32 %v1717_v12, 0.0  ;;  %v1758_v17 = vld [vmem:[#allocation5 + $0x11] sm:$0xff] }
 0x3d0   : > { %1741 = vst.msk [vmem:[#allocation5 + $0x51] sm:$0xff] %vm817_vm6, %v1722_v14  ;;  %v1723_v18 = vmax.f32 %v1715_v15, 0.0  ;;  %v1765_v19 = vpack.c.bf16 %v1758_v17, %v1757_v13  ;;  %v1761_v27 = vld [vmem:[#allocation5 + $0x41] sm:$0xff]  ;;  %v1746_v32 = vld [vmem:[#allocation5 + $0x10] sm:$0xff] }
 0x3d1   : > { %1744 = vst.msk [vmem:[#allocation5 + $0x81] sm:$0xff] %vm817_vm6, %v1725_v16  ;;  %v4426_v20 = vpack.c.bf16 %v1725_v16, %v1724_v11  ;;  %v1759_v21 = vld [vmem:[#allocation5 + $0x21] sm:$0xff]  ;;  %v1753_v35 = vpack.c.bf16 %v1746_v32, %v1745_v31  ;;  %v1748_v38 = vld [vmem:[#allocation5 + $0x30] sm:$0xff] }
 0x3d2   : > { %1742 = vst.msk [vmem:[#allocation5 + $0x61] sm:$0xff] %vm817_vm6, %v1723_v18  ;;  %v4429_v23 = vpack.c.bf16 %v1723_v18, %v1722_v14  ;;  %3563 = vmatprep.mubr.msk.bf16.mxu1 %vm817_vm6, %v1765_v19  ;;  %v4432_v24 = vpack.c.bf16 %v1760_v22, %v1759_v21  ;;  %v1747_v36 = vld [vmem:[#allocation5 + $0x20] sm:$0xff]  ;;  %v1930_v45 = vld [vmem:[#allocation5 + $0x12] sm:$0xff]  ;;  %v1733_v19 = vld [vmem:[%s4084_s23 + $0x1c] sm:$0xf] }
 0x3d3   : > { %v4448_v39 = vpack.c.bf16 %v1748_v38, %v1747_v36  ;;  %v1749_v41 = vld [vmem:[#allocation5 + $0x40] sm:$0xff]  ;;  %v1937_v48 = vpack.c.bf16 %v1930_v45, %v1929_v44  ;;  %v1932_v51 = vld [vmem:[#allocation5 + $0x32] sm:$0xff]  ;;  %v2037_v62 = vpack.c.bf16 %v1747_v36, %v1746_v32 }
 0x3d4   : > { %3564 = vmatmul.mubr.msk.bf16.vlgmr.msra.gmra.mrb[8].mxu1 %vm817_vm6, %v4432_v24  ;;  %v1931_v49 = vld [vmem:[#allocation5 + $0x22] sm:$0xff]  ;;  %v2038_v63 = vpack.c.bf16 %v1749_v41, %v1748_v38  ;;  %v1731_v11 = vld [vmem:[%s4084_s23 + $0x14] sm:$0xf]  ;;  %v1732_v15 = vld [vmem:[%s4084_s23 + $0x18] sm:$0xf] }
 0x3d5   : > { %3572 = vmatpush3.bf16.msra.mxu1 %v1862_v25  ;;  %v4461_v52 = vpack.c.bf16 %v1932_v51, %v1931_v49  ;;  %v1933_v54 = vld [vmem:[#allocation5 + $0x42] sm:$0xff]  ;;  %v2246_v14 = vsel %vm862_vm5, %v1731_v11, 0  ;;  %v2229_v16 = vpack.c.bf16 %v1931_v49, %v1930_v45  ;;  %v2347_v17 = vsel %vm862_vm5, %v1732_v15, 0 }
 0x3d6   : > { %3832 = vmatprep.subr.msk.bf16.mxu1 %vm862_vm5, %v1728_v26  ;;  %v1764_v34 = vld [vmem:[#allocation5 + $0x71] sm:$0xff]  ;;  %v1734_v22 = vld [vmem:[%s4084_s23 + $0x20] sm:$0xf] }
 0x3d7   : > { %v1762_v28 = vld [vmem:[#allocation5 + $0x51] sm:$0xff]  ;;  %v2547_v26 = vsel %vm862_vm5, %v1734_v22, 0 }
 0x3d8   : > { %v4439_v30 = vpack.c.bf16 %v1762_v28, %v1761_v27  ;;  %v1750_v37 = vld [vmem:[#allocation5 + $0x50] sm:$0xff]  ;;  %v2036_v12 = vld [vmem:[#allocation5 + $0x80] sm:$0xff] }
 0x3d9   : > { %v1763_v33 = vld [vmem:[#allocation5 + $0x61] sm:$0xff]  ;;  %v4451_v42 = vpack.c.bf16 %v1750_v37, %v1749_v41  ;;  %v1752_v46 = vld [vmem:[#allocation5 + $0x70] sm:$0xff] }
 0x3da   : > { %3567 = vmatprep.mubr.msk.bf16.mxu1 %vm817_vm6, %v4439_v30  ;;  %v4443_v29 = vpack.c.bf16 %v1764_v34, %v1763_v33  ;;  %v1751_v43 = vld [vmem:[#allocation5 + $0x60] sm:$0xff]  ;;  %v1934_v50 = vld [vmem:[#allocation5 + $0x52] sm:$0xff]  ;;  %v2040_v13 = vpack.c.bf16 %v2036_v12, %v1752_v46 }
 0x3db   : > { %v1756_v47 = vpack.c.bf16 %v1752_v46, %v1751_v43  ;;  %v4464_v56 = vpack.c.bf16 %v1934_v50, %v1933_v54  ;;  %v1935_v59 = vld [vmem:[#allocation5 + $0x62] sm:$0xff]  ;;  %v1936_v60 = vld [vmem:[#allocation5 + $0x72] sm:$0xff]  ;;  %v2039_v3 = vpack.c.bf16 %v1751_v43, %v1750_v37 }
 0x3dc   : > { %3568 = vmatmul.mubr.msk.bf16.gmra.mrb[12].mxu1 %vm817_vm6, %v4443_v29  ;;  %v1940_v61 = vpack.c.bf16 %v1936_v60, %v1935_v59  ;;  %v2231_v18 = vpack.c.bf16 %v1935_v59, %v1934_v50  ;;  %v2428_v27 = vld [vmem:[#allocation5 + $0x81] sm:$0xff]  ;;  %v2429_v28 = vld [vmem:[#allocation5 + $0x91] sm:$0xff] }
 0x3dd   : > { %3573 = vmatprep.mubr.msk.bf16.mxu1 %vm817_vm6, %v1753_v35  ;;  %v2433_v31 = vpack.c.bf16 %v2429_v28, %v2428_v27 }
 0x3e4   : > { %3574 = vmatmul.mubr.msk.bf16.vlgmr.msra.gmra.mrb[8].mxu1 %vm817_vm6, %v4448_v39 }
 0x3e5   : > { %3582 = vmatpush3.bf16.msra.mxu1 %v1954_v40  ;;  %3577 = vmatprep.mubr.msk.bf16.mxu1 %vm817_vm6, %v4451_v42 }
 0x3e6   : > { %3833 = vmatprep.subr.msk.bf16.mxu1 %vm862_vm5, %v1729_v1 }
 0x3ec   : > { %3578 = vmatmul.mubr.msk.bf16.gmra.mrb[12].mxu1 %vm817_vm6, %v1756_v47 }
 0x3ed   : > { %3583 = vmatprep.mubr.msk.bf16.mxu1 %vm817_vm6, %v1937_v48 }
 0x3f4   : > { %3584 = vmatmul.mubr.msk.bf16.vlgmr.msra.gmra.mrb[8].mxu1 %vm817_vm6, %v4461_v52 }
 0x3f5   : > { %3592 = vmatpush3.bf16.msra.mxu1 %v2054_v53  ;;  %3587 = vmatprep.mubr.msk.bf16.mxu1 %vm817_vm6, %v4464_v56 }
 0x3f6   : > { %3834 = vmatprep.subr.msk.bf16.mxu1 %vm862_vm5, %v1730_v57 }
 0x3fc   : > { %3588 = vmatmul.mubr.msk.bf16.gmra.mrb[12].mxu1 %vm817_vm6, %v1940_v61 }
 0x3fd   : > { %3593 = vmatprep.mubr.msk.bf16.mxu1 %vm817_vm6, %v2037_v62 }
 0x404   : > { %3594 = vmatmul.mubr.msk.bf16.vlgmr.msra.gmra.mrb[8].mxu1 %vm817_vm6, %v2038_v63 }
 0x405   : > { %3602 = vmatpush3.bf16.msra.mxu1 %v2146_v2  ;;  %3597 = vmatprep.mubr.msk.bf16.mxu1 %vm817_vm6, %v2039_v3 }
 0x406   : > { %3835 = vmatprep.subr.msk.bf16.mxu1 %vm862_vm5, %v1731_v11 }
 0x40c   : > { %3598 = vmatmul.mubr.msk.bf16.gmra.mrb[12].mxu1 %vm817_vm6, %v2040_v13 }
 0x40d   : > { %3603 = vmatprep.mubr.msk.bf16.mxu1 %vm817_vm6, %v4421_v58  ;;  %v2230_v58 = vpack.c.bf16 %v1933_v54, %v1932_v51 }
 0x414   : > { %3604 = vmatmul.mubr.msk.bf16.vlgmr.msra.gmra.mrb[8].mxu1 %vm817_vm6, %v4418_v55  ;;  %v2228_v55 = vld [vmem:[#allocation5 + $0x82] sm:$0xff] }
 0x415   : > { %3612 = vmatpush3.bf16.msra.mxu1 %v2246_v14  ;;  %3607 = vmatprep.mubr.msk.bf16.mxu1 %vm817_vm6, %v4429_v23  ;;  %v2232_v21 = vpack.c.bf16 %v2228_v55, %v1936_v60  ;;  %v2329_v23 = vld [vmem:[#allocation5 + $0x90] sm:$0xff] }
 0x416   : > { %3836 = vmatprep.subr.msk.bf16.mxu1 %vm862_vm5, %v1732_v15  ;;  %v2333_v25 = vpack.c.bf16 %v2329_v23, %v2036_v12 }
 0x41c   : > { %3608 = vmatmul.mubr.msk.bf16.gmra.mrb[12].mxu1 %vm817_vm6, %v4426_v20  ;;  %v2447_v20 = vsel %vm862_vm5, %v1733_v19, 0 }
 0x41d   : > { %3613 = vmatprep.mubr.msk.bf16.mxu1 %vm817_vm6, %v2229_v16 }
 0x424   : > { %3614 = vmatmul.mubr.msk.bf16.vlgmr.msra.gmra.mrb[8].mxu1 %vm817_vm6, %v2230_v58 }
 0x425   : > { %3622 = vmatpush3.bf16.msra.mxu1 %v2347_v17  ;;  %3617 = vmatprep.mubr.msk.bf16.mxu1 %vm817_vm6, %v2231_v18 }
 0x426   : > { %3837 = vmatprep.subr.msk.bf16.mxu1 %vm862_vm5, %v1733_v19 }
 0x42c   : > { %3618 = vmatmul.mubr.msk.bf16.gmra.mrb[12].mxu1 %vm817_vm6, %v2232_v21 }
 0x42d   : > { %3623 = vmatprep.mubr.msk.bf16.mxu1 %vm817_vm6, %v4448_v39 }
 0x434   : > { %3624 = vmatmul.mubr.msk.bf16.vlgmr.msra.gmra.mrb[8].mxu1 %vm817_vm6, %v4451_v42 }
 0x435   : > { %3632 = vmatpush3.bf16.msra.mxu1 %v2447_v20  ;;  %3627 = vmatprep.mubr.msk.bf16.mxu1 %vm817_vm6, %v1756_v47 }
 0x436   : > { %3838 = vmatprep.subr.msk.bf16.mxu1 %vm862_vm5, %v1734_v22 }
 0x43c   : > { %3628 = vmatmul.mubr.msk.bf16.gmra.mrb[12].mxu1 %vm817_vm6, %v2333_v25  ;;  %v2758_v25 = vld [vmem:[%s4100_s19] sm:$0xff] }
 0x43d   : > { %3633 = vmatprep.mubr.msk.bf16.mxu1 %vm817_vm6, %v4432_v24  ;;  %v2529_v24 = vld [vmem:[#allocation5 + $0x92] sm:$0xff]  ;;  %3651 = vmatprep.subr.mxu0 %v2758_v25 }
 0x43e   : > { %v2533_v32 = vpack.c.bf16 %v2529_v24, %v2228_v55  ;;  %3652 = vmatpush3.msra.mxu0 %v2758_v25 }
 0x444   : > { %3634 = vmatmul.mubr.msk.bf16.vlgmr.msra.gmra.mrb[8].mxu1 %vm817_vm6, %v4439_v30  ;;  %v3320_v30 = vld [vmem:[%s4701_s15] ss:$0 sm:$0xff] }
 0x445   : > { %3642 = vmatpush3.bf16.msra.mxu1 %v2547_v26  ;;  %3637 = vmatprep.mubr.msk.bf16.mxu1 %vm817_vm6, %v4443_v29  ;;  %v2757_v26 = vld [vmem:[%s4095_s30] sm:$0xff] }
 0x446   : > { %3665 = vmatprep.subr.mxu0 %v2757_v26 }
 0x44c   : > { %3638 = vmatmul.mubr.msk.bf16.gmra.mrb[12].mxu1 %vm817_vm6, %v2433_v31 }
 0x44d   : > { %3643 = vmatprep.mubr.msk.bf16.mxu1 %vm817_vm6, %v4461_v52 }
 0x454   : > { %3644 = vmatmul.mubr.msk.bf16.vlgmr.msra.gmra.mrb[8].mxu1 %vm817_vm6, %v4464_v56 }
 0x455   : > { %3647 = vmatprep.mubr.msk.bf16.mxu1 %vm817_vm6, %v1940_v61 }
 0x45c   : > { %3648 = vmatmul.mubr.msk.bf16.gmra.mrb[12].mxu1 %vm817_vm6, %v2533_v32 }
 0x527   : > { %v3645_v33 = vpop.f32.mrb[8].mxu1 }
 0x528   : > { %v4526_v34 = vadd.f32 %v3645_v33, %v3320_v30  ;;  %v2583_v29 = vpop.f32.mrb[9].mxu1 }
 0x529   : > { %v4528_v35 = vadd.f32 %v3320_v30, %v2583_v29  ;;  %v3646_v36 = vpop.f32.mrb[10].mxu1 }
 0x52a   : > { %3892 = vtanh.f32 %v4526_v34  ;;  %v4531_v37 = vadd.f32 %v3646_v36, %v3320_v30  ;;  %v2586_v38 = vpop.f32.mrb[11].mxu1 }
 0x52b   : > { %3894 = vtanh.f32 %v4528_v35  ;;  %v4534_v39 = vadd.f32 %v3320_v30, %v2586_v38 }
 0x52c   : > { %3896 = vtanh.f32 %v4531_v37 }
 0x52d   : > { %3898 = vtanh.f32 %v4534_v39 }
 0x52f   : > { %v3649_v40 = vpop.f32.mrb[12].mxu1 }
 0x530   : > { %v4538_v41 = vadd.f32 %v3649_v40, %v3320_v30  ;;  %v2599_v42 = vpop.f32.mrb[13].mxu1 }
 0x531   : > { %v4540_v1 = vadd.f32 %v3320_v30, %v2599_v42  ;;  %v3650_v43 = vpop.f32.mrb[14].mxu1 }
 0x532   : > { %3900 = vtanh.f32 %v4538_v41  ;;  %v4543_v44 = vadd.f32 %v3650_v43, %v3320_v30  ;;  %v2602_v45 = vpop.f32.mrb[15].mxu1 }
 0x533   : > { %3902 = vtanh.f32 %v4540_v1  ;;  %v4546_v46 = vadd.f32 %v3320_v30, %v2602_v45 }
 0x534   : > { %v3893_v47 = vpop.eup %3892  ;;  %3904 = vtanh.f32 %v4543_v44 }
 0x535   : > { %v3895_v48 = vpop.eup %3894  ;;  %v4549_v49 = vmul.f32 2.0, %v3893_v47  ;;  %3906 = vtanh.f32 %v4546_v46 }
 0x536   : > { %v3897_v50 = vpop.eup %3896  ;;  %v4552_v51 = vmul.f32 2.0, %v3895_v48 }
 0x537   : > { %v3899_v52 = vpop.eup %3898  ;;  %v2656_v53 = vmul.f32 1.442695, %v4549_v49  ;;  %v4555_v54 = vmul.f32 2.0, %v3897_v50 }
 0x538   : > { %v2652_v56 = vmul.f32 1.442695, %v4552_v51  ;;  %v4558_v57 = vmul.f32 2.0, %v3899_v52 }
 0x539   : > { %3908 = vpow2.f32 %v2656_v53  ;;  %v2658_v59 = vmul.f32 1.442695, %v4555_v54 }
 0x53a   : > { %3910 = vpow2.f32 %v2652_v56  ;;  %v2654_v60 = vmul.f32 1.442695, %v4558_v57 }
 0x53b   : > { %3912 = vpow2.f32 %v2658_v59  ;;  %v2723_v59 = vsel %vm817_vm6, %v4549_v49, 0.0 }
 0x53c   : > { %v3901_v61 = vpop.eup %3900  ;;  %3914 = vpow2.f32 %v2654_v60 }
 0x53d   : > { %v3903_v62 = vpop.eup %3902  ;;  %v4562_v2 = vmul.f32 2.0, %v3901_v61 }
 0x53e   : > { %v3905_v63 = vpop.eup %3904  ;;  %v4564_v3 = vmul.f32 2.0, %v3903_v62 }
 0x53f   : > { %v3907_v11 = vpop.eup %3906  ;;  %v4567_v13 = vmul.f32 2.0, %v3905_v63  ;;  %v2664_v15 = vmul.f32 1.442695, %v4562_v2 }
 0x540   : > { %v2660_v12 = vmul.f32 1.442695, %v4564_v3  ;;  %v4569_v14 = vmul.f32 2.0, %v3907_v11 }
 0x541   : > { %v2666_v18 = vmul.f32 1.442695, %v4567_v13  ;;  %v2738_v49 = vsel %vm817_vm6, %v4567_v13, 0.0 }
 0x542   : > { %3916 = vpow2.f32 %v2660_v12  ;;  %v2662_v16 = vmul.f32 1.442695, %v4569_v14 }
 0x543   : > { %v3909_v58 = vpop.eup %3908 }
 0x544   : > { %v3911_v17 = vpop.eup %3910  ;;  %3918 = vpow2.f32 %v2662_v16  ;;  %2680 = vrot.lane.b32.xlu1 %v3909_v58, %s3965_s20 }
 0x545   : > { %2676 = vrot.lane.b32.xlu0 %v3911_v17, %s3965_s20  ;;  %3920 = vpow2.f32 %v2664_v15  ;;  %v3913_v19 = vpop.eup %3912 }
 0x546   : > { %v3915_v55 = vpop.eup %3914  ;;  %3922 = vpow2.f32 %v2666_v18 }
 0x548   : > { %2682 = vrot.lane.b32.xlu1 %v3913_v19, %s3965_s20 }
 0x549   : > { %2678 = vrot.lane.b32.xlu0 %v3915_v55, %s3965_s20 }
 0x54c   : > { %v3917_v21 = vpop.eup %3916 }
 0x54d   : > { %2684 = vrot.lane.b32.xlu0 %v3917_v21, %s3965_s20 }
 0x54e   : > { %v3919_v20 = vpop.eup %3918 }
 0x54f   : > { %2686 = vrot.lane.b32.xlu1 %v3919_v20, %s3965_s20  ;;  %v3921_v22 = vpop.eup %3920 }
 0x550   : > { %v3923_v23 = vpop.eup %3922 }
 0x551   : > { %2688 = vrot.lane.b32.xlu0 %v3921_v22, %s3965_s20  ;;  %v2716_v22 = vld [vmem:[#allocation3] sm:$0x1] }
 0x553   : > { %2690 = vrot.lane.b32.xlu1 %v3923_v23, %s3965_s20 }
 0x5b6   : > { %v2681_v27 = vpop.permute.xlu1 %2680 }
 0x5b7   : > { %v2677_v28 = vpop.permute.xlu0 %2676  ;;  %v2702_v24 = vmul.f32 %v2681_v27, %v4276_v5 }
 0x5b8   : > { %v2700_v31 = vmul.f32 %v2677_v28, %v4267_v0 }
 0x5b9   : > { %v2710_v36 = vadd.f32 %v2702_v24, %v4526_v34 }
 0x5ba   : > { %v2708_v32 = vadd.f32 %v2700_v31, %v4528_v35  ;;  %v2683_v30 = vpop.permute.xlu1 %2682 }
 0x5bb   : > { %v2679_v33 = vpop.permute.xlu0 %2678  ;;  %v2703_v38 = vmul.f32 %v2683_v30, %v4282_v6 }
 0x5bc   : > { %v2701_v29 = vmul.f32 %v2679_v33, %v4274_v4  ;;  %2767 = vrot.lane.b32.xlu0 %v2708_v32, %s3966_s0 }
 0x5bd   : > { %v2711_v35 = vadd.f32 %v2703_v38, %v4531_v37 }
 0x5be   : > { %v2709_v40 = vadd.f32 %v2701_v29, %v4534_v39 }
 0x5bf   : > { %v2685_v42 = vpop.permute.xlu0 %2684 }
 0x5c0   : > { %v2704_v43 = vmul.f32 %v2685_v42, %v4284_v7  ;;  %2771 = vrot.lane.b32.xlu0 %v2710_v36, %s3966_s0  ;;  %2769 = vrot.lane.b32.xlu1 %v2709_v40, %s3966_s0 }
 0x5c1   : > { %v2687_v45 = vpop.permute.xlu1 %2686 }
 0x5c2   : > { %v2712_v47 = vadd.f32 %v2704_v43, %v4540_v1  ;;  %v2705_v48 = vmul.f32 %v2687_v45, %v4286_v8  ;;  %v2717_v1 = vsel %vm817_vm6, %v4552_v51, 0.0  ;;  %v2729_v51 = vsel %vm817_vm6, %v4564_v3, 0.0 }
 0x5c3   : > { %v2689_v50 = vpop.permute.xlu0 %2688 }
 0x5c4   : > { %v2706_v52 = vmul.f32 %v2689_v50, %v4293_v9  ;;  %2775 = vrot.lane.b32.xlu0 %v2712_v47, %s3966_s0  ;;  %2773 = vrot.lane.b32.xlu1 %v2711_v35, %s3966_s0  ;;  %v2713_v39 = vadd.f32 %v2705_v48, %v4546_v46  ;;  %v2726_v46 = vsel %vm817_vm6, %v4555_v54, 0.0  ;;  %v2735_v54 = vsel %vm817_vm6, %v4562_v2, 0.0 }
 0x5c5   : > { %v2691_v34 = vpop.permute.xlu1 %2690 }
 0x5c6   : > { %v2714_v53 = vadd.f32 %v2706_v52, %v4538_v41  ;;  %v2707_v56 = vmul.f32 %v2691_v34, %v4299_v10  ;;  %v2720_v41 = vsel %vm817_vm6, %v4558_v57, 0.0 }
 0x5c8   : > { %2779 = vrot.lane.b32.xlu0 %v2714_v53, %s3966_s0  ;;  %2777 = vrot.lane.b32.xlu1 %v2713_v39, %s3966_s0  ;;  %v2715_v37 = vadd.f32 %v2707_v56, %v4543_v44  ;;  %v2732_v44 = vsel %vm817_vm6, %v4569_v14, 0.0 }
 0x5cc   : > { %2781 = vrot.lane.b32.xlu1 %v2715_v37, %s3966_s0 }
 0x5e7   : > { %2718 = vadd.xlane.f32.xlu0 %v2717_v1 }
 0x5eb   : > { %2724 = vadd.xlane.f32.xlu0 %v2723_v59 }
 0x5ef   : > { %2727 = vadd.xlane.f32.xlu0 %v2726_v46 }
 0x5f0   : > { %2721 = vadd.xlane.f32.xlu1 %v2720_v41 }
 0x5f3   : > { %2733 = vadd.xlane.f32.xlu0 %v2732_v44 }
 0x5f4   : > { %2730 = vadd.xlane.f32.xlu1 %v2729_v51 }
 0x5f7   : > { %2739 = vadd.xlane.f32.xlu0 %v2738_v49 }
 0x5f8   : > { %2736 = vadd.xlane.f32.xlu1 %v2735_v54 }
 0x62e   : > { %v2768_v60 = vpop.permute.xlu0 %2767 }
 0x62f   : > { %3653 = vmatprep.mubr.msk.f32.mxu0 %vm817_vm6, %v2768_v60 }
 0x632   : > { %v2772_v57 = vpop.permute.xlu0 %2771  ;;  %v2770_v61 = vpop.permute.xlu1 %2769 }
 0x633   : > { %3654 = vmatmul.mubr.msk.f32.vlgmr.msra.gmra.mrb[8].mxu0 %vm817_vm6, %v2770_v61 }
 0x634   : > { %3666 = vmatpush3.msra.mxu0 %v2757_v26  ;;  %3656 = vmatprep.mubr.msk.f32.mxu0 %vm817_vm6, %v2772_v57 }
 0x636   : > { %v2776_v62 = vpop.permute.xlu0 %2775  ;;  %v2774_v63 = vpop.permute.xlu1 %2773 }
 0x637   : > { %3657 = vmatmul.mubr.msk.f32.gmra.mrb[10].mxu0 %vm817_vm6, %v2774_v63 }
 0x638   : > { %3659 = vmatprep.mubr.msk.f32.mxu0 %vm817_vm6, %v2776_v62 }
 0x63a   : > { %v2780_v3 = vpop.permute.xlu0 %2779  ;;  %v2778_v11 = vpop.permute.xlu1 %2777 }
 0x63b   : > { %3660 = vmatmul.mubr.msk.f32.gmra.mrb[12].mxu0 %vm817_vm6, %v2778_v11 }
 0x63c   : > { %3662 = vmatprep.mubr.msk.f32.mxu0 %vm817_vm6, %v2780_v3 }
 0x63e   : > { %v2782_v2 = vpop.permute.xlu1 %2781 }
 0x63f   : > { %3663 = vmatmul.mubr.msk.f32.gmra.mrb[14].mxu0 %vm817_vm6, %v2782_v2 }
 0x640   : > { %3667 = vmatprep.mubr.msk.f32.mxu0 %vm817_vm6, %v4267_v0 }
 0x643   : > { %3668 = vmatmul.mubr.msk.f32.vlgmr.msra.gmra.mrb[8].mxu0 %vm817_vm6, %v4274_v4 }
 0x644   : > { %3670 = vmatprep.mubr.msk.f32.mxu0 %vm817_vm6, %v4276_v5 }
 0x647   : > { %3671 = vmatmul.mubr.msk.f32.gmra.mrb[10].mxu0 %vm817_vm6, %v4282_v6 }
 0x648   : > { %3673 = vmatprep.mubr.msk.f32.mxu0 %vm817_vm6, %v4284_v7 }
 0x64b   : > { %3674 = vmatmul.mubr.msk.f32.gmra.mrb[12].mxu0 %vm817_vm6, %v4286_v8 }
 0x64c   : > { %3676 = vmatprep.mubr.msk.f32.mxu0 %vm817_vm6, %v4293_v9 }
 0x64f   : > { %3677 = vmatmul.mubr.msk.f32.gmra.mrb[14].mxu0 %vm817_vm6, %v4299_v10 }
 0x674   : > { %v2719_v0 = vpop.xlane.xlu0 %2718 }
 0x678   : > { %v2725_v4 = vpop.xlane.xlu0 %2724 }
 0x67c   : > { %v2728_v12 = vpop.xlane.xlu0 %2727 }
 0x67d   : > { %v2722_v13 = vpop.xlane.xlu1 %2721 }
 0x67e   : > { %v2741_v5 = vadd.f32 %v2722_v13, %v2719_v0 }
 0x680   : > { %v2742_v14 = vadd.f32 %v2741_v5, %v2725_v4  ;;  %v2734_v16 = vpop.xlane.xlu0 %2733 }
 0x681   : > { %v2731_v15 = vpop.xlane.xlu1 %2730 }
 0x682   : > { %v2743_v6 = vadd.f32 %v2742_v14, %v2728_v12 }
 0x684   : > { %v2744_v58 = vadd.f32 %v2743_v6, %v2731_v15  ;;  %v2740_v8 = vpop.xlane.xlu0 %2739 }
 0x685   : > { %v2737_v17 = vpop.xlane.xlu1 %2736 }
 0x686   : > { %v2745_v7 = vadd.f32 %v2744_v58, %v2734_v16 }
 0x688   : > { %v2746_v18 = vadd.f32 %v2745_v7, %v2737_v17 }
 0x68a   : > { %v2747_v19 = vadd.f32 %v2746_v18, %v2740_v8 }
 0x68c   : > { %v2748_v55 = vrot.slane %v2747_v19, 4 }
 0x68e   : > { %v2749_v9 = vadd.f32 %v2748_v55, %v2747_v19 }
 0x690   : > { %v2750_v21 = vrot.slane %v2749_v9, 2 }
 0x692   : > { %v2751_v20 = vadd.f32 %v2750_v21, %v2749_v9 }
 0x694   : > { %v2752_v10 = vrot.slane %v2751_v20, 1 }
 0x696   : > { %v2753_v23 = vadd.f32 %v2752_v10, %v2751_v20 }
 0x698   : > { %v2754_v25 = vadd.f32 %v2753_v23, %v2716_v22 }
 0x69a   : > { %2756 = vst.msk [vmem:[#allocation3] sm:$0x1] %vm2755_vm7, %v2754_v25 }
 0x6a1   : > { %v3062_v47 = vld [vmem:[#allocation3] sm:$0x1] (!%p3337_p8) }
 0x6a2   : > { %3063 = vst.msk [vmem:[%s482_s17] sm:$0x1] (!%p3337_p8), %vm2755_vm7, %v3062_v47 }
 0x716   : > { %v3669_v26 = vpop.f32.mrb[8].mxu0 }
 0x717   : > { %3035 = vst.msk [vmem:[#allocation2 + $0x8] sm:$0xff] %vm3033_vm8, %v3669_v26  ;;  %v2994_v27 = vpop.f32.mrb[9].mxu0 }
 0x718   : > { %3034 = vst.msk [vmem:[#allocation2] sm:$0xff] %vm3033_vm8, %v2994_v27 }
 0x71a   : > { %v3672_v28 = vpop.f32.mrb[10].mxu0 }
 0x71b   : > { %3037 = vst.msk [vmem:[#allocation2 + $0x18] sm:$0xff] %vm3033_vm8, %v3672_v28  ;;  %v3004_v31 = vpop.f32.mrb[11].mxu0 }
 0x71c   : > { %3036 = vst.msk [vmem:[#allocation2 + $0x10] sm:$0xff] %vm3033_vm8, %v3004_v31 }
 0x71e   : > { %v3675_v24 = vpop.f32.mrb[12].mxu0  ;;  %3045 = sbr.rel (%p3337_p8) target bundleno = 1837 (0x72d), region = 64  ;;  %v3047_v36 = vld [vmem:[#allocation2 + $0x8] sm:$0xff] (!%p3337_p8) }
 0x71f   : > { %3039 = vst.msk [vmem:[#allocation2 + $0x28] sm:$0xff] %vm3033_vm8, %v3675_v24  ;;  %v3014_v32 = vpop.f32.mrb[13].mxu0  ;;  %v3046_v29 = vld [vmem:[#allocation2] sm:$0xff] (!%p3337_p8)  ;;  %3055 = vst.msk [vmem:[%s4090_s27 + $0x8] sm:$0xff] (!%p3337_p8), %vm3033_vm8, %v3047_v36 }
 0x720   : > { %3038 = vst.msk [vmem:[#allocation2 + $0x20] sm:$0xff] %vm3033_vm8, %v3014_v32  ;;  %3054 = vst.msk [vmem:[%s4090_s27] sm:$0xff] (!%p3337_p8), %vm3033_vm8, %v3046_v29 }
 0x722   : > { %v3678_v30 = vpop.f32.mrb[14].mxu0  ;;  %v3049_v40 = vld [vmem:[#allocation2 + $0x18] sm:$0xff] (!%p3337_p8) }
 0x723   : > { %3041 = vst.msk [vmem:[#allocation2 + $0x38] sm:$0xff] %vm3033_vm8, %v3678_v30  ;;  %v3024_v33 = vpop.f32.mrb[15].mxu0  ;;  %v3048_v38 = vld [vmem:[#allocation2 + $0x10] sm:$0xff] (!%p3337_p8)  ;;  %3057 = vst.msk [vmem:[%s4090_s27 + $0x18] sm:$0xff] (!%p3337_p8), %vm3033_vm8, %v3049_v40 }
 0x724   : > { %3040 = vst.msk [vmem:[#allocation2 + $0x30] sm:$0xff] %vm3033_vm8, %v3024_v33  ;;  %3056 = vst.msk [vmem:[%s4090_s27 + $0x10] sm:$0xff] (!%p3337_p8), %vm3033_vm8, %v3048_v38 }
 0x726   : > { %v3051_v43 = vld [vmem:[#allocation2 + $0x28] sm:$0xff] }
 0x727   : > { %v3050_v42 = vld [vmem:[#allocation2 + $0x20] sm:$0xff]  ;;  %3059 = vst.msk [vmem:[%s4090_s27 + $0x28] sm:$0xff] %vm3033_vm8, %v3051_v43 }
 0x728   : > { %3058 = vst.msk [vmem:[%s4090_s27 + $0x20] sm:$0xff] %vm3033_vm8, %v3050_v42 }
 0x72a   : > { %v3053_v35 = vld [vmem:[#allocation2 + $0x38] sm:$0xff] }
 0x72b   : > { %v3052_v45 = vld [vmem:[#allocation2 + $0x30] sm:$0xff]  ;;  %3061 = vst.msk [vmem:[%s4090_s27 + $0x38] sm:$0xff] %vm3033_vm8, %v3053_v35 }
 0x72c   : > { %3060 = vst.msk [vmem:[%s4090_s27 + $0x30] sm:$0xff] %vm3033_vm8, %v3052_v45 }
 0x72d PF: > { %s4702_s19 = sld [smem:[#allocation8_spill]]  ;;  %s4703_s13 = sld [smem:[#allocation6_spill]] }
 0x72e   : > { %s4704_s14 = sld [smem:[#allocation7_spill]]  ;;  %s4705_s15 = sld [smem:[#allocation9_spill]] }
 0x72f   : > { %s4706_s16 = sld [smem:[#allocation10_spill]] }
 0x733   : > { %s21_s17 = sadd.s32 1, %s4702_s19  }
 0x734   : > { %p18_p9 = scmp.ge.s32.totalorder %s21_s17, 6  }
 0x736   :  { %20 = sbr.rel (!%p18_p9) target bundleno = 3 (0x3), region = 128 }

</bundles_post_ra>
